<compile_context>
chip_gen: v7x
topology: tpu7x:2x2x1
jax: 0.10.0
libtpu: 0.0.40
codegen_flags: <defaults>
</compile_context>

<pallas_src>
import functools
import math

import jax
import jax.numpy as jnp
from jax.experimental import pallas as pl
from jax.experimental.pallas import tpu as pltpu


def _ghost_bottleneck_kernel(x_ref, mask_ref,
                             w1p_ref, w1c_ref, b1p_ref, b1c_ref,
                             w2pa_ref, w2pb_ref, w2c_ref, b2p_ref, b2c_ref,
                             o_ref, *, W, new1, init2, new2):
    """One grid step = `nb` images, channel-major, lanes = nb*H*W.

    x_ref:    (Cin,  L)  f32   input block (L = nb*H*W lanes, lane-dense)
    mask_ref: (9,    L)  f32   per-tap zero-padding border masks (tiled per image)
    w1p_ref:  (init1, Cin)   bf16  ghost1 primary 1x1 weight, BN scale folded in
    w1c_ref:  (new1, 9)  f32   ghost1 cheap dw-3x3 taps (kept channels, scale folded)
    b1p_ref:  (init1, 1) f32   ghost1 primary BN shift
    b1c_ref:  (new1, 1)  f32   ghost1 cheap   BN shift
    w2pa_ref: (init2, init1) bf16  ghost2 primary weight columns hitting x1
    w2pb_ref: (init2, new1)  bf16  ghost2 primary weight columns hitting x2
    w2c_ref:  (new2, 9)  f32   ghost2 cheap dw-3x3 taps (kept channels, scale folded)
    b2p_ref:  (init2, 1) f32   ghost2 primary BN shift
    b2c_ref:  (new2, 1)  f32   ghost2 cheap   BN shift
    o_ref:    (out_chs, L) f32 output block (out_chs = init2 + new2 = Cin)
    """
    L = x_ref.shape[-1]
    x_t = x_ref[...]                                        # (Cin, L) f32

    def dw3x3(z, taps_ref):
        # 'same' 3x3 depthwise conv on (C, L): spatial shifts via XLU rolls
        # (separate slot, ~free), zero padding via precomputed border masks,
        # per-channel FMA on the VPU.  The center tap (k == 4) has an all-ones
        # mask and seeds the accumulator directly.
        acc = z * taps_ref[:, 4:5]
        for kh in range(3):
            for kw in range(3):
                k = kh * 3 + kw
                if k == 4:
                    continue
                off = (kh - 1) * W + (kw - 1)               # flat spatial tap offset
                shifted = pltpu.roll(z, shift=(-off) % L, axis=1)
                acc = acc + (shifted * mask_ref[k:k + 1, :]) * taps_ref[:, k:k + 1]
        return acc

    # ---- ghost1: primary 1x1 conv (scale-folded bf16 MXU matmul) -> +shift -> ReLU
    x1 = jnp.dot(w1p_ref[...], x_t.astype(jnp.bfloat16),
                 preferred_element_type=jnp.float32)        # (init1, L) f32
    x1 = jnp.maximum(x1 + b1p_ref[...], 0.0)
    # ---- ghost1: cheap depthwise 3x3 (only the new1 kept channels) -> +shift -> ReLU
    x2 = jnp.maximum(dw3x3(x1[:new1, :], w1c_ref) + b1c_ref[...], 0.0)

    # ---- ghost2: primary 1x1 conv as a split matmul over [x1 ; x2] (no concat copy)
    y1 = jnp.dot(w2pa_ref[...], x1.astype(jnp.bfloat16),
                 preferred_element_type=jnp.float32)
    y1 = y1 + jnp.dot(w2pb_ref[...], x2.astype(jnp.bfloat16),
                      preferred_element_type=jnp.float32)
    y1 = y1 + b2p_ref[...]                                  # (init2, L), no ReLU
    # ---- ghost2: cheap depthwise 3x3 (only the new2 kept channels), no ReLU
    y2 = dw3x3(y1[:new2, :], w2c_ref) + b2c_ref[...]        # (new2, L)

    # ---- identity shortcut + direct split stores (no output concat copy) ----
    o_ref[0:init2, :] = (y1 + x_t[0:init2, :]).astype(o_ref.dtype)
    o_ref[init2:init2 + new2, :] = (y2 + x_t[init2:init2 + new2, :]).astype(o_ref.dtype)


def _dw_border_masks(H, W):
    """(9, H*W) f32: mask[k, h*W+w] = 1 iff the k-th 3x3 tap stays in the image."""
    hh = jnp.arange(H).reshape(H, 1)
    ww = jnp.arange(W).reshape(1, W)
    masks = []
    for kh in range(3):
        for kw in range(3):
            dh, dw = kh - 1, kw - 1
            valid = ((hh + dh >= 0) & (hh + dh < H) &
                     (ww + dw >= 0) & (ww + dw < W))
            masks.append(valid.reshape(H * W))
    return jnp.stack(masks, axis=0).astype(jnp.float32)


_LANE_TARGET = 512   # lanes per grid step; amortizes ~0.35us/step pipeline overhead


def _images_per_step(N, HW):
    """Images folded onto the lane axis per grid step (always a divisor of N)."""
    nb = 1
    for d in range(1, N + 1):
        if N % d:
            continue
        nb = d
        if d * HW >= _LANE_TARGET:
            break
    # v7x has 2 TensorCores sharing the "parallel" grid axis: keep >= 2 grid
    # steps whenever the batch still leaves each step lane-dense enough.
    if N // nb == 1 and nb % 2 == 0 and (nb // 2) * HW >= _LANE_TARGET:
        nb //= 2
    return nb


def ghost_bottleneck(x_nchw, params, *, stride=1, eps=1e-5):
    """GhostBottleneck forward (inference). (N, Cin, H, W) -> (N, Cout, H, W)."""
    assert stride == 1, "TODO(synk): stride>1 path not implemented"
    N, Cin, H, W = x_nchw.shape
    HW = H * W
    w1p, w1c = params["w1p"], params["w1c"]
    w2p, w2c = params["w2p"], params["w2c"]
    init1, init2 = w1p.shape[0], w2p.shape[0]
    mid_chs, out_chs = w2p.shape[1], params["out_chs"]
    new1 = mid_chs - init1           # ghost1 cheap-op channels actually kept
    new2 = out_chs - init2           # ghost2 cheap-op channels actually kept
    assert Cin == out_chs, "identity-shortcut path requires in_chs == out_chs"
    assert 0 < new1 <= w1c.shape[0] and 0 < new2 <= w2c.shape[0]

    def fold(bn_p):  # inference BatchNorm -> per-channel (scale, shift) in f32
        gamma, beta, mean, var = bn_p
        inv = (gamma / jnp.sqrt(var + eps)).astype(jnp.float32)
        return inv, (beta - mean * inv).astype(jnp.float32)

    s1p, b1p = fold(params["bn1p"])
    s1c, b1c = fold(params["bn1c"])
    s2p, b2p = fold(params["bn2p"])
    s2c, b2c = fold(params["bn2c"])

    # BN scales folded into the conv weights (f32 math, bf16 cast last for the
    # MXU operands); only the +shift epilogues remain inside the kernel.
    w1p_bf = (w1p.astype(jnp.float32) * s1p[:, None]).astype(jnp.bfloat16)
    w2p_f = w2p.astype(jnp.float32) * s2p[:, None]
    w2pa_bf = w2p_f[:, :init1].astype(jnp.bfloat16)            # columns hitting x1
    w2pb_bf = w2p_f[:, init1:mid_chs].astype(jnp.bfloat16)     # columns hitting x2
    w1c_f = (w1c[:new1].astype(jnp.float32) * s1c[:new1, None, None]).reshape(new1, 9)
    w2c_f = (w2c[:new2].astype(jnp.float32) * s2c[:new2, None, None]).reshape(new2, 9)
    b1p_c = b1p.reshape(init1, 1)
    b1c_c = b1c[:new1].reshape(new1, 1)
    b2p_c = b2p.reshape(init2, 1)
    b2c_c = b2c[:new2].reshape(new2, 1)

    # Channel-major, lane-dense activation layout: (Cin, N*HW) with `nb` images
    # folded onto the lane axis per grid step.  The two tiny relayouts around
    # the kernel are far cheaper than the grid steps they remove (batch folding
    # only matters when HW is small).
    nb = _images_per_step(N, HW)
    L = nb * HW
    grid_n = N // nb
    assert grid_n == 1 or L % 128 == 0, "lane block must be 128-aligned"
    x_cm = x_nchw.astype(jnp.float32).transpose(1, 0, 2, 3).reshape(Cin, N * HW)
    masks = jnp.tile(_dw_border_masks(H, W), (1, nb))           # (9, L), per-image

    kernel = functools.partial(_ghost_bottleneck_kernel,
                               W=W, new1=new1, init2=init2, new2=new2)
    rep = lambda g: (0, 0)

    out_cm = pl.pallas_call(
        kernel,
        out_shape=jax.ShapeDtypeStruct((out_chs, N * HW), jnp.float32),
        grid=(grid_n,),
        in_specs=[
            pl.BlockSpec((Cin, L), lambda g: (0, g)),
            pl.BlockSpec((9, L), rep),
            pl.BlockSpec((init1, Cin), rep),
            pl.BlockSpec((new1, 9), rep),
            pl.BlockSpec((init1, 1), rep),
            pl.BlockSpec((new1, 1), rep),
            pl.BlockSpec((init2, init1), rep),
            pl.BlockSpec((init2, new1), rep),
            pl.BlockSpec((new2, 9), rep),
            pl.BlockSpec((init2, 1), rep),
            pl.BlockSpec((new2, 1), rep),
        ],
        out_specs=pl.BlockSpec((out_chs, L), lambda g: (0, g)),
        compiler_params=pltpu.CompilerParams(dimension_semantics=("parallel",)),
    )(x_cm, masks, w1p_bf, w1c_f, b1p_c, b1c_c,
      w2pa_bf, w2pb_bf, w2c_f, b2p_c, b2c_c)
    return out_cm.reshape(out_chs, N, H, W).transpose(1, 0, 2, 3)


def ghost_bottleneck_reference(x, params, *, eps=1e-5):
    """Pure-JAX reference for the torch GhostBottleneck forward (inference).

    1x1 convs use the kernel's operand precision (inference-BN scale folded into
    the weight in f32, bf16 MXU operands, f32 accumulation); depthwise convs and
    their BatchNorms run unfolded in f32 at HIGHEST precision.
    """
    mid_chs = params["w2p"].shape[1]
    out_chs = params["out_chs"]

    def conv1x1_bn(z, w_oi, bn_p, relu):
        gamma, beta, mean, var = bn_p
        inv = gamma / jnp.sqrt(var + eps)
        w = (w_oi * inv[:, None]).astype(jnp.bfloat16)[:, :, None, None]
        y = jax.lax.conv_general_dilated(
            z.astype(jnp.bfloat16), w, (1, 1), ((0, 0), (0, 0)),
            dimension_numbers=("NCHW", "OIHW", "NCHW"),
            preferred_element_type=jnp.float32)
        y = y + (beta - mean * inv)[None, :, None, None]
        return jnp.maximum(y, 0.0) if relu else y

    def dwconv_bn(z, w_c33, bn_p, relu):
        gamma, beta, mean, var = bn_p
        C = z.shape[1]
        y = jax.lax.conv_general_dilated(
            z, w_c33[:, None, :, :], (1, 1), ((1, 1), (1, 1)),
            dimension_numbers=("NCHW", "OIHW", "NCHW"),
            feature_group_count=C,
            precision=jax.lax.Precision.HIGHEST,
            preferred_element_type=jnp.float32)
        inv = gamma / jnp.sqrt(var + eps)
        y = y * inv[None, :, None, None] + (beta - mean * inv)[None, :, None, None]
        return jnp.maximum(y, 0.0) if relu else y

    x1 = conv1x1_bn(x, params["w1p"], params["bn1p"], relu=True)
    x2 = dwconv_bn(x1, params["w1c"], params["bn1c"], relu=True)
    xm = jnp.concatenate([x1, x2], axis=1)[:, :mid_chs]
    y1 = conv1x1_bn(xm, params["w2p"], params["bn2p"], relu=False)
    y2 = dwconv_bn(y1, params["w2c"], params["bn2c"], relu=False)
    yo = jnp.concatenate([y1, y2], axis=1)[:, :out_chs]
    return yo + x


if __name__ == "__main__":
    key = jax.random.PRNGKey(0)
    ks = jax.random.split(key, 21)

    # GhostBottleneck(in_chs=16, mid_chs=32, out_chs=16, stride=1, se_ratio=0)
    # on a (2, 16, 16, 16) NCHW input (identity-shortcut path, ratio=2).
    N, H, W = 2, 16, 16
    in_chs, mid_chs, out_chs = 16, 32, 16
    init1 = math.ceil(mid_chs / 2)   # ghost1 primary-conv channels
    init2 = math.ceil(out_chs / 2)   # ghost2 primary-conv channels

    def rnd(k, shape, scale=1.0):
        return scale * jax.random.normal(k, shape, jnp.float32)

    def bn_init(k0, k1, k2, k3, c):  # (gamma, beta, running_mean, running_var)
        return (jnp.abs(rnd(k0, (c,))) + 0.5, rnd(k1, (c,), 0.1),
                rnd(k2, (c,), 0.1), jnp.abs(rnd(k3, (c,))) + 0.5)

    x = rnd(ks[0], (N, in_chs, H, W))
    params = dict(
        out_chs=out_chs,
        w1p=rnd(ks[1], (init1, in_chs), 0.1),   # 1x1 conv weight (O, I)
        w1c=rnd(ks[2], (init1, 3, 3), 0.1),     # depthwise 3x3 weight (C, kh, kw)
        w2p=rnd(ks[3], (init2, mid_chs), 0.1),
        w2c=rnd(ks[4], (init2, 3, 3), 0.1),
        bn1p=bn_init(ks[5], ks[6], ks[7], ks[8], init1),
        bn1c=bn_init(ks[9], ks[10], ks[11], ks[12], init1),
        bn2p=bn_init(ks[13], ks[14], ks[15], ks[16], init2),
        bn2c=bn_init(ks[17], ks[18], ks[19], ks[20], init2),
    )

    out = jax.block_until_ready(ghost_bottleneck(x, params))
    ref = jax.block_until_ready(ghost_bottleneck_reference(x, params))

    assert out.shape == (N, out_chs, H, W), out.shape
    err = float(jnp.max(jnp.abs(out - ref)))
    assert jnp.allclose(out, ref, atol=2e-3, rtol=2e-3), f"max abs err = {err}"
    print("KERNEL_OK")
</pallas_src>

<mosaic_0001>
module attributes {stable_mosaic.version = 11 : i64} {
  func.func @_ghost_bottleneck_kernel(%arg0: i32, %arg1: memref<16x512xf32, #tpu.memory_space<vmem>>, %arg2: memref<9x512xf32, #tpu.memory_space<vmem>>, %arg3: memref<16x16xbf16, #tpu.memory_space<vmem>>, %arg4: memref<16x9xf32, #tpu.memory_space<vmem>>, %arg5: memref<16x1xf32, #tpu.memory_space<vmem>>, %arg6: memref<16x1xf32, #tpu.memory_space<vmem>>, %arg7: memref<8x16xbf16, #tpu.memory_space<vmem>>, %arg8: memref<8x16xbf16, #tpu.memory_space<vmem>>, %arg9: memref<8x9xf32, #tpu.memory_space<vmem>>, %arg10: memref<8x1xf32, #tpu.memory_space<vmem>>, %arg11: memref<8x1xf32, #tpu.memory_space<vmem>>, %arg12: memref<16x512xf32, #tpu.memory_space<vmem>>) attributes {dimension_semantics = [#tpu.dimension_semantics<parallel>], iteration_bounds = array<i64: 1>, scalar_prefetch = 0 : i64, scratch_operands = 0 : i64, tpu.core_type = #tpu.core_type<tc>, window_params = [{transform_indices = @transform_0, window_bounds = array<i64: 16, 512>}, {pipeline_mode = #tpu.pipeline_mode<synchronous>, transform_indices = @transform_1, window_bounds = array<i64: 9, 512>}, {pipeline_mode = #tpu.pipeline_mode<synchronous>, transform_indices = @transform_2, window_bounds = array<i64: 16, 16>}, {pipeline_mode = #tpu.pipeline_mode<synchronous>, transform_indices = @transform_3, window_bounds = array<i64: 16, 9>}, {pipeline_mode = #tpu.pipeline_mode<synchronous>, transform_indices = @transform_4, window_bounds = array<i64: 16, 1>}, {pipeline_mode = #tpu.pipeline_mode<synchronous>, transform_indices = @transform_5, window_bounds = array<i64: 16, 1>}, {pipeline_mode = #tpu.pipeline_mode<synchronous>, transform_indices = @transform_6, window_bounds = array<i64: 8, 16>}, {pipeline_mode = #tpu.pipeline_mode<synchronous>, transform_indices = @transform_7, window_bounds = array<i64: 8, 16>}, {pipeline_mode = #tpu.pipeline_mode<synchronous>, transform_indices = @transform_8, window_bounds = array<i64: 8, 9>}, {pipeline_mode = #tpu.pipeline_mode<synchronous>, transform_indices = @transform_9, window_bounds = array<i64: 8, 1>}, {pipeline_mode = #tpu.pipeline_mode<synchronous>, transform_indices = @transform_10, window_bounds = array<i64: 8, 1>}, {transform_indices = @transform_11, window_bounds = array<i64: 16, 512>}]} {
    %c0 = arith.constant 0 : index
    %c0_0 = arith.constant 0 : index
    %0 = vector.load %arg1[%c0, %c0_0] : memref<16x512xf32, #tpu.memory_space<vmem>>, vector<16x512xf32>
    %c0_1 = arith.constant 0 : index
    %c0_2 = arith.constant 0 : index
    %1 = vector.load %arg3[%c0_1, %c0_2] : memref<16x16xbf16, #tpu.memory_space<vmem>>, vector<16x16xbf16>
    %2 = arith.truncf %0 : vector<16x512xf32> to vector<16x512xbf16>
    %cst = arith.constant dense<0.000000e+00> : vector<16x512xf32>
    %3 = tpu.matmul %1, %2, %cst {dimension_numbers = #tpu.dot_dimension_numbers<[1], [0], [0], [1], [0, 0, 1, 1], [], []>} : vector<16x16xbf16>, vector<16x512xbf16>, vector<16x512xf32> -> vector<16x512xf32>
    %c0_3 = arith.constant 0 : index
    %c0_4 = arith.constant 0 : index
    %4 = vector.load %arg5[%c0_3, %c0_4] : memref<16x1xf32, #tpu.memory_space<vmem>>, vector<16x1xf32>
    %5 = vector.broadcast %4 : vector<16x1xf32> to vector<16x512xf32>
    %6 = arith.addf %3, %5 : vector<16x512xf32>
    %cst_5 = arith.constant 0.000000e+00 : f32
    %7 = vector.broadcast %cst_5 : f32 to vector<16x512xf32>
    %8 = arith.maximumf %6, %7 : vector<16x512xf32>
    %c0_6 = arith.constant 0 : index
    %c4 = arith.constant 4 : index
    %9 = vector.load %arg4[%c0_6, %c4] : memref<16x9xf32, #tpu.memory_space<vmem>>, vector<16x1xf32>
    %10 = vector.broadcast %9 : vector<16x1xf32> to vector<16x512xf32>
    %11 = arith.mulf %8, %10 : vector<16x512xf32>
    %c17_i32 = arith.constant 17 : i32
    %12 = tpu.dynamic_rotate %8 by %c17_i32 dim 1 : vector<16x512xf32>, i32 -> vector<16x512xf32>
    %c0_7 = arith.constant 0 : index
    %c0_8 = arith.constant 0 : index
    %13 = vector.load %arg2[%c0_7, %c0_8] : memref<9x512xf32, #tpu.memory_space<vmem>>, vector<1x512xf32>
    %14 = vector.broadcast %13 : vector<1x512xf32> to vector<16x512xf32>
    %15 = arith.mulf %12, %14 : vector<16x512xf32>
    %c0_9 = arith.constant 0 : index
    %c0_10 = arith.constant 0 : index
    %16 = vector.load %arg4[%c0_9, %c0_10] : memref<16x9xf32, #tpu.memory_space<vmem>>, vector<16x1xf32>
    %17 = vector.broadcast %16 : vector<16x1xf32> to vector<16x512xf32>
    %18 = arith.mulf %15, %17 : vector<16x512xf32>
    %19 = arith.addf %11, %18 : vector<16x512xf32>
    %c16_i32 = arith.constant 16 : i32
    %20 = tpu.dynamic_rotate %8 by %c16_i32 dim 1 : vector<16x512xf32>, i32 -> vector<16x512xf32>
    %c1 = arith.constant 1 : index
    %c0_11 = arith.constant 0 : index
    %21 = vector.load %arg2[%c1, %c0_11] : memref<9x512xf32, #tpu.memory_space<vmem>>, vector<1x512xf32>
    %22 = vector.broadcast %21 : vector<1x512xf32> to vector<16x512xf32>
    %23 = arith.mulf %20, %22 : vector<16x512xf32>
    %c0_12 = arith.constant 0 : index
    %c1_13 = arith.constant 1 : index
    %24 = vector.load %arg4[%c0_12, %c1_13] : memref<16x9xf32, #tpu.memory_space<vmem>>, vector<16x1xf32>
    %25 = vector.broadcast %24 : vector<16x1xf32> to vector<16x512xf32>
    %26 = arith.mulf %23, %25 : vector<16x512xf32>
    %27 = arith.addf %19, %26 : vector<16x512xf32>
    %c15_i32 = arith.constant 15 : i32
    %28 = tpu.dynamic_rotate %8 by %c15_i32 dim 1 : vector<16x512xf32>, i32 -> vector<16x512xf32>
    %c2 = arith.constant 2 : index
    %c0_14 = arith.constant 0 : index
    %29 = vector.load %arg2[%c2, %c0_14] : memref<9x512xf32, #tpu.memory_space<vmem>>, vector<1x512xf32>
    %30 = vector.broadcast %29 : vector<1x512xf32> to vector<16x512xf32>
    %31 = arith.mulf %28, %30 : vector<16x512xf32>
    %c0_15 = arith.constant 0 : index
    %c2_16 = arith.constant 2 : index
    %32 = vector.load %arg4[%c0_15, %c2_16] : memref<16x9xf32, #tpu.memory_space<vmem>>, vector<16x1xf32>
    %33 = vector.broadcast %32 : vector<16x1xf32> to vector<16x512xf32>
    %34 = arith.mulf %31, %33 : vector<16x512xf32>
    %35 = arith.addf %27, %34 : vector<16x512xf32>
    %c1_i32 = arith.constant 1 : i32
    %36 = tpu.dynamic_rotate %8 by %c1_i32 dim 1 : vector<16x512xf32>, i32 -> vector<16x512xf32>
    %c3 = arith.constant 3 : index
    %c0_17 = arith.constant 0 : index
    %37 = vector.load %arg2[%c3, %c0_17] : memref<9x512xf32, #tpu.memory_space<vmem>>, vector<1x512xf32>
    %38 = vector.broadcast %37 : vector<1x512xf32> to vector<16x512xf32>
    %39 = arith.mulf %36, %38 : vector<16x512xf32>
    %c0_18 = arith.constant 0 : index
    %c3_19 = arith.constant 3 : index
    %40 = vector.load %arg4[%c0_18, %c3_19] : memref<16x9xf32, #tpu.memory_space<vmem>>, vector<16x1xf32>
    %41 = vector.broadcast %40 : vector<16x1xf32> to vector<16x512xf32>
    %42 = arith.mulf %39, %41 : vector<16x512xf32>
    %43 = arith.addf %35, %42 : vector<16x512xf32>
    %c511_i32 = arith.constant 511 : i32
    %44 = tpu.dynamic_rotate %8 by %c511_i32 dim 1 : vector<16x512xf32>, i32 -> vector<16x512xf32>
    %c5 = arith.constant 5 : index
    %c0_20 = arith.constant 0 : index
    %45 = vector.load %arg2[%c5, %c0_20] : memref<9x512xf32, #tpu.memory_space<vmem>>, vector<1x512xf32>
    %46 = vector.broadcast %45 : vector<1x512xf32> to vector<16x512xf32>
    %47 = arith.mulf %44, %46 : vector<16x512xf32>
    %c0_21 = arith.constant 0 : index
    %c5_22 = arith.constant 5 : index
    %48 = vector.load %arg4[%c0_21, %c5_22] : memref<16x9xf32, #tpu.memory_space<vmem>>, vector<16x1xf32>
    %49 = vector.broadcast %48 : vector<16x1xf32> to vector<16x512xf32>
    %50 = arith.mulf %47, %49 : vector<16x512xf32>
    %51 = arith.addf %43, %50 : vector<16x512xf32>
    %c497_i32 = arith.constant 497 : i32
    %52 = tpu.dynamic_rotate %8 by %c497_i32 dim 1 : vector<16x512xf32>, i32 -> vector<16x512xf32>
    %c6 = arith.constant 6 : index
    %c0_23 = arith.constant 0 : index
    %53 = vector.load %arg2[%c6, %c0_23] : memref<9x512xf32, #tpu.memory_space<vmem>>, vector<1x512xf32>
    %54 = vector.broadcast %53 : vector<1x512xf32> to vector<16x512xf32>
    %55 = arith.mulf %52, %54 : vector<16x512xf32>
    %c0_24 = arith.constant 0 : index
    %c6_25 = arith.constant 6 : index
    %56 = vector.load %arg4[%c0_24, %c6_25] : memref<16x9xf32, #tpu.memory_space<vmem>>, vector<16x1xf32>
    %57 = vector.broadcast %56 : vector<16x1xf32> to vector<16x512xf32>
    %58 = arith.mulf %55, %57 : vector<16x512xf32>
    %59 = arith.addf %51, %58 : vector<16x512xf32>
    %c496_i32 = arith.constant 496 : i32
    %60 = tpu.dynamic_rotate %8 by %c496_i32 dim 1 : vector<16x512xf32>, i32 -> vector<16x512xf32>
    %c7 = arith.constant 7 : index
    %c0_26 = arith.constant 0 : index
    %61 = vector.load %arg2[%c7, %c0_26] : memref<9x512xf32, #tpu.memory_space<vmem>>, vector<1x512xf32>
    %62 = vector.broadcast %61 : vector<1x512xf32> to vector<16x512xf32>
    %63 = arith.mulf %60, %62 : vector<16x512xf32>
    %c0_27 = arith.constant 0 : index
    %c7_28 = arith.constant 7 : index
    %64 = vector.load %arg4[%c0_27, %c7_28] : memref<16x9xf32, #tpu.memory_space<vmem>>, vector<16x1xf32>
    %65 = vector.broadcast %64 : vector<16x1xf32> to vector<16x512xf32>
    %66 = arith.mulf %63, %65 : vector<16x512xf32>
    %67 = arith.addf %59, %66 : vector<16x512xf32>
    %c495_i32 = arith.constant 495 : i32
    %68 = tpu.dynamic_rotate %8 by %c495_i32 dim 1 : vector<16x512xf32>, i32 -> vector<16x512xf32>
    %c8 = arith.constant 8 : index
    %c0_29 = arith.constant 0 : index
    %69 = vector.load %arg2[%c8, %c0_29] : memref<9x512xf32, #tpu.memory_space<vmem>>, vector<1x512xf32>
    %70 = vector.broadcast %69 : vector<1x512xf32> to vector<16x512xf32>
    %71 = arith.mulf %68, %70 : vector<16x512xf32>
    %c0_30 = arith.constant 0 : index
    %c8_31 = arith.constant 8 : index
    %72 = vector.load %arg4[%c0_30, %c8_31] : memref<16x9xf32, #tpu.memory_space<vmem>>, vector<16x1xf32>
    %73 = vector.broadcast %72 : vector<16x1xf32> to vector<16x512xf32>
    %74 = arith.mulf %71, %73 : vector<16x512xf32>
    %75 = arith.addf %67, %74 : vector<16x512xf32>
    %c0_32 = arith.constant 0 : index
    %c0_33 = arith.constant 0 : index
    %76 = vector.load %arg6[%c0_32, %c0_33] : memref<16x1xf32, #tpu.memory_space<vmem>>, vector<16x1xf32>
    %77 = vector.broadcast %76 : vector<16x1xf32> to vector<16x512xf32>
    %78 = arith.addf %75, %77 : vector<16x512xf32>
    %cst_34 = arith.constant 0.000000e+00 : f32
    %79 = vector.broadcast %cst_34 : f32 to vector<16x512xf32>
    %80 = arith.maximumf %78, %79 : vector<16x512xf32>
    %c0_35 = arith.constant 0 : index
    %c0_36 = arith.constant 0 : index
    %81 = vector.load %arg7[%c0_35, %c0_36] : memref<8x16xbf16, #tpu.memory_space<vmem>>, vector<8x16xbf16>
    %82 = arith.truncf %8 : vector<16x512xf32> to vector<16x512xbf16>
    %cst_37 = arith.constant dense<0.000000e+00> : vector<8x512xf32>
    %83 = tpu.matmul %81, %82, %cst_37 {dimension_numbers = #tpu.dot_dimension_numbers<[1], [0], [0], [1], [0, 0, 1, 1], [], []>} : vector<8x16xbf16>, vector<16x512xbf16>, vector<8x512xf32> -> vector<8x512xf32>
    %c0_38 = arith.constant 0 : index
    %c0_39 = arith.constant 0 : index
    %84 = vector.load %arg8[%c0_38, %c0_39] : memref<8x16xbf16, #tpu.memory_space<vmem>>, vector<8x16xbf16>
    %85 = arith.truncf %80 : vector<16x512xf32> to vector<16x512xbf16>
    %cst_40 = arith.constant dense<0.000000e+00> : vector<8x512xf32>
    %86 = tpu.matmul %84, %85, %cst_40 {dimension_numbers = #tpu.dot_dimension_numbers<[1], [0], [0], [1], [0, 0, 1, 1], [], []>} : vector<8x16xbf16>, vector<16x512xbf16>, vector<8x512xf32> -> vector<8x512xf32>
    %87 = arith.addf %83, %86 : vector<8x512xf32>
    %c0_41 = arith.constant 0 : index
    %c0_42 = arith.constant 0 : index
    %88 = vector.load %arg10[%c0_41, %c0_42] : memref<8x1xf32, #tpu.memory_space<vmem>>, vector<8x1xf32>
    %89 = vector.broadcast %88 : vector<8x1xf32> to vector<8x512xf32>
    %90 = arith.addf %87, %89 : vector<8x512xf32>
    %c0_43 = arith.constant 0 : index
    %c4_44 = arith.constant 4 : index
    %91 = vector.load %arg9[%c0_43, %c4_44] : memref<8x9xf32, #tpu.memory_space<vmem>>, vector<8x1xf32>
    %92 = vector.broadcast %91 : vector<8x1xf32> to vector<8x512xf32>
    %93 = arith.mulf %90, %92 : vector<8x512xf32>
    %c17_i32_45 = arith.constant 17 : i32
    %94 = tpu.dynamic_rotate %90 by %c17_i32_45 dim 1 : vector<8x512xf32>, i32 -> vector<8x512xf32>
    %c0_46 = arith.constant 0 : index
    %c0_47 = arith.constant 0 : index
    %95 = vector.load %arg2[%c0_46, %c0_47] : memref<9x512xf32, #tpu.memory_space<vmem>>, vector<1x512xf32>
    %96 = vector.broadcast %95 : vector<1x512xf32> to vector<8x512xf32>
    %97 = arith.mulf %94, %96 : vector<8x512xf32>
    %c0_48 = arith.constant 0 : index
    %c0_49 = arith.constant 0 : index
    %98 = vector.load %arg9[%c0_48, %c0_49] : memref<8x9xf32, #tpu.memory_space<vmem>>, vector<8x1xf32>
    %99 = vector.broadcast %98 : vector<8x1xf32> to vector<8x512xf32>
    %100 = arith.mulf %97, %99 : vector<8x512xf32>
    %101 = arith.addf %93, %100 : vector<8x512xf32>
    %c16_i32_50 = arith.constant 16 : i32
    %102 = tpu.dynamic_rotate %90 by %c16_i32_50 dim 1 : vector<8x512xf32>, i32 -> vector<8x512xf32>
    %c1_51 = arith.constant 1 : index
    %c0_52 = arith.constant 0 : index
    %103 = vector.load %arg2[%c1_51, %c0_52] : memref<9x512xf32, #tpu.memory_space<vmem>>, vector<1x512xf32>
    %104 = vector.broadcast %103 : vector<1x512xf32> to vector<8x512xf32>
    %105 = arith.mulf %102, %104 : vector<8x512xf32>
    %c0_53 = arith.constant 0 : index
    %c1_54 = arith.constant 1 : index
    %106 = vector.load %arg9[%c0_53, %c1_54] : memref<8x9xf32, #tpu.memory_space<vmem>>, vector<8x1xf32>
    %107 = vector.broadcast %106 : vector<8x1xf32> to vector<8x512xf32>
    %108 = arith.mulf %105, %107 : vector<8x512xf32>
    %109 = arith.addf %101, %108 : vector<8x512xf32>
    %c15_i32_55 = arith.constant 15 : i32
    %110 = tpu.dynamic_rotate %90 by %c15_i32_55 dim 1 : vector<8x512xf32>, i32 -> vector<8x512xf32>
    %c2_56 = arith.constant 2 : index
    %c0_57 = arith.constant 0 : index
    %111 = vector.load %arg2[%c2_56, %c0_57] : memref<9x512xf32, #tpu.memory_space<vmem>>, vector<1x512xf32>
    %112 = vector.broadcast %111 : vector<1x512xf32> to vector<8x512xf32>
    %113 = arith.mulf %110, %112 : vector<8x512xf32>
    %c0_58 = arith.constant 0 : index
    %c2_59 = arith.constant 2 : index
    %114 = vector.load %arg9[%c0_58, %c2_59] : memref<8x9xf32, #tpu.memory_space<vmem>>, vector<8x1xf32>
    %115 = vector.broadcast %114 : vector<8x1xf32> to vector<8x512xf32>
    %116 = arith.mulf %113, %115 : vector<8x512xf32>
    %117 = arith.addf %109, %116 : vector<8x512xf32>
    %c1_i32_60 = arith.constant 1 : i32
    %118 = tpu.dynamic_rotate %90 by %c1_i32_60 dim 1 : vector<8x512xf32>, i32 -> vector<8x512xf32>
    %c3_61 = arith.constant 3 : index
    %c0_62 = arith.constant 0 : index
    %119 = vector.load %arg2[%c3_61, %c0_62] : memref<9x512xf32, #tpu.memory_space<vmem>>, vector<1x512xf32>
    %120 = vector.broadcast %119 : vector<1x512xf32> to vector<8x512xf32>
    %121 = arith.mulf %118, %120 : vector<8x512xf32>
    %c0_63 = arith.constant 0 : index
    %c3_64 = arith.constant 3 : index
    %122 = vector.load %arg9[%c0_63, %c3_64] : memref<8x9xf32, #tpu.memory_space<vmem>>, vector<8x1xf32>
    %123 = vector.broadcast %122 : vector<8x1xf32> to vector<8x512xf32>
    %124 = arith.mulf %121, %123 : vector<8x512xf32>
    %125 = arith.addf %117, %124 : vector<8x512xf32>
    %c511_i32_65 = arith.constant 511 : i32
    %126 = tpu.dynamic_rotate %90 by %c511_i32_65 dim 1 : vector<8x512xf32>, i32 -> vector<8x512xf32>
    %c5_66 = arith.constant 5 : index
    %c0_67 = arith.constant 0 : index
    %127 = vector.load %arg2[%c5_66, %c0_67] : memref<9x512xf32, #tpu.memory_space<vmem>>, vector<1x512xf32>
    %128 = vector.broadcast %127 : vector<1x512xf32> to vector<8x512xf32>
    %129 = arith.mulf %126, %128 : vector<8x512xf32>
    %c0_68 = arith.constant 0 : index
    %c5_69 = arith.constant 5 : index
    %130 = vector.load %arg9[%c0_68, %c5_69] : memref<8x9xf32, #tpu.memory_space<vmem>>, vector<8x1xf32>
    %131 = vector.broadcast %130 : vector<8x1xf32> to vector<8x512xf32>
    %132 = arith.mulf %129, %131 : vector<8x512xf32>
    %133 = arith.addf %125, %132 : vector<8x512xf32>
    %c497_i32_70 = arith.constant 497 : i32
    %134 = tpu.dynamic_rotate %90 by %c497_i32_70 dim 1 : vector<8x512xf32>, i32 -> vector<8x512xf32>
    %c6_71 = arith.constant 6 : index
    %c0_72 = arith.constant 0 : index
    %135 = vector.load %arg2[%c6_71, %c0_72] : memref<9x512xf32, #tpu.memory_space<vmem>>, vector<1x512xf32>
    %136 = vector.broadcast %135 : vector<1x512xf32> to vector<8x512xf32>
    %137 = arith.mulf %134, %136 : vector<8x512xf32>
    %c0_73 = arith.constant 0 : index
    %c6_74 = arith.constant 6 : index
    %138 = vector.load %arg9[%c0_73, %c6_74] : memref<8x9xf32, #tpu.memory_space<vmem>>, vector<8x1xf32>
    %139 = vector.broadcast %138 : vector<8x1xf32> to vector<8x512xf32>
    %140 = arith.mulf %137, %139 : vector<8x512xf32>
    %141 = arith.addf %133, %140 : vector<8x512xf32>
    %c496_i32_75 = arith.constant 496 : i32
    %142 = tpu.dynamic_rotate %90 by %c496_i32_75 dim 1 : vector<8x512xf32>, i32 -> vector<8x512xf32>
    %c7_76 = arith.constant 7 : index
    %c0_77 = arith.constant 0 : index
    %143 = vector.load %arg2[%c7_76, %c0_77] : memref<9x512xf32, #tpu.memory_space<vmem>>, vector<1x512xf32>
    %144 = vector.broadcast %143 : vector<1x512xf32> to vector<8x512xf32>
    %145 = arith.mulf %142, %144 : vector<8x512xf32>
    %c0_78 = arith.constant 0 : index
    %c7_79 = arith.constant 7 : index
    %146 = vector.load %arg9[%c0_78, %c7_79] : memref<8x9xf32, #tpu.memory_space<vmem>>, vector<8x1xf32>
    %147 = vector.broadcast %146 : vector<8x1xf32> to vector<8x512xf32>
    %148 = arith.mulf %145, %147 : vector<8x512xf32>
    %149 = arith.addf %141, %148 : vector<8x512xf32>
    %c495_i32_80 = arith.constant 495 : i32
    %150 = tpu.dynamic_rotate %90 by %c495_i32_80 dim 1 : vector<8x512xf32>, i32 -> vector<8x512xf32>
    %c8_81 = arith.constant 8 : index
    %c0_82 = arith.constant 0 : index
    %151 = vector.load %arg2[%c8_81, %c0_82] : memref<9x512xf32, #tpu.memory_space<vmem>>, vector<1x512xf32>
    %152 = vector.broadcast %151 : vector<1x512xf32> to vector<8x512xf32>
    %153 = arith.mulf %150, %152 : vector<8x512xf32>
    %c0_83 = arith.constant 0 : index
    %c8_84 = arith.constant 8 : index
    %154 = vector.load %arg9[%c0_83, %c8_84] : memref<8x9xf32, #tpu.memory_space<vmem>>, vector<8x1xf32>
    %155 = vector.broadcast %154 : vector<8x1xf32> to vector<8x512xf32>
    %156 = arith.mulf %153, %155 : vector<8x512xf32>
    %157 = arith.addf %149, %156 : vector<8x512xf32>
    %c0_85 = arith.constant 0 : index
    %c0_86 = arith.constant 0 : index
    %158 = vector.load %arg11[%c0_85, %c0_86] : memref<8x1xf32, #tpu.memory_space<vmem>>, vector<8x1xf32>
    %159 = vector.broadcast %158 : vector<8x1xf32> to vector<8x512xf32>
    %160 = arith.addf %157, %159 : vector<8x512xf32>
    %161 = vector.extract_strided_slice %0 {offsets = [0, 0], sizes = [8, 512], strides = [1, 1]} : vector<16x512xf32> to vector<8x512xf32>
    %162 = arith.addf %90, %161 : vector<8x512xf32>
    %c0_87 = arith.constant 0 : index
    %c0_88 = arith.constant 0 : index
    %163 = vector.load %arg12[%c0_87, %c0_88] : memref<16x512xf32, #tpu.memory_space<vmem>>, vector<8x512xf32>
    tpu.vector_store %arg12[%c0_87, %c0_88], %162 {strides = array<i32>} : memref<16x512xf32, #tpu.memory_space<vmem>>, vector<8x512xf32>,
    %164 = vector.extract_strided_slice %0 {offsets = [8, 0], sizes = [8, 512], strides = [1, 1]} : vector<16x512xf32> to vector<8x512xf32>
    %165 = arith.addf %160, %164 : vector<8x512xf32>
    %c8_89 = arith.constant 8 : index
    %c0_90 = arith.constant 0 : index
    %166 = vector.load %arg12[%c8_89, %c0_90] : memref<16x512xf32, #tpu.memory_space<vmem>>, vector<8x512xf32>
    tpu.vector_store %arg12[%c8_89, %c0_90], %165 {strides = array<i32>} : memref<16x512xf32, #tpu.memory_space<vmem>>, vector<8x512xf32>,
    return
  }
  func.func @transform_0(%arg0: i32) -> (i32, i32) {
    %c0_i32 = arith.constant 0 : i32
    %c0_i32_0 = arith.constant 0 : i32
    return %c0_i32, %arg0 : i32, i32
  }
  func.func @transform_1(%arg0: i32) -> (i32, i32) {
    %c0_i32 = arith.constant 0 : i32
    %c0_i32_0 = arith.constant 0 : i32
    %c0_i32_1 = arith.constant 0 : i32
    return %c0_i32, %c0_i32_0 : i32, i32
  }
  func.func @transform_2(%arg0: i32) -> (i32, i32) {
    %c0_i32 = arith.constant 0 : i32
    %c0_i32_0 = arith.constant 0 : i32
    %c0_i32_1 = arith.constant 0 : i32
    return %c0_i32, %c0_i32_0 : i32, i32
  }
  func.func @transform_3(%arg0: i32) -> (i32, i32) {
    %c0_i32 = arith.constant 0 : i32
    %c0_i32_0 = arith.constant 0 : i32
    %c0_i32_1 = arith.constant 0 : i32
    return %c0_i32, %c0_i32_0 : i32, i32
  }
  func.func @transform_4(%arg0: i32) -> (i32, i32) {
    %c0_i32 = arith.constant 0 : i32
    %c0_i32_0 = arith.constant 0 : i32
    %c0_i32_1 = arith.constant 0 : i32
    return %c0_i32, %c0_i32_0 : i32, i32
  }
  func.func @transform_5(%arg0: i32) -> (i32, i32) {
    %c0_i32 = arith.constant 0 : i32
    %c0_i32_0 = arith.constant 0 : i32
    %c0_i32_1 = arith.constant 0 : i32
    return %c0_i32, %c0_i32_0 : i32, i32
  }
  func.func @transform_6(%arg0: i32) -> (i32, i32) {
    %c0_i32 = arith.constant 0 : i32
    %c0_i32_0 = arith.constant 0 : i32
    %c0_i32_1 = arith.constant 0 : i32
    return %c0_i32, %c0_i32_0 : i32, i32
  }
  func.func @transform_7(%arg0: i32) -> (i32, i32) {
    %c0_i32 = arith.constant 0 : i32
    %c0_i32_0 = arith.constant 0 : i32
    %c0_i32_1 = arith.constant 0 : i32
    return %c0_i32, %c0_i32_0 : i32, i32
  }
  func.func @transform_8(%arg0: i32) -> (i32, i32) {
    %c0_i32 = arith.constant 0 : i32
    %c0_i32_0 = arith.constant 0 : i32
    %c0_i32_1 = arith.constant 0 : i32
    return %c0_i32, %c0_i32_0 : i32, i32
  }
  func.func @transform_9(%arg0: i32) -> (i32, i32) {
    %c0_i32 = arith.constant 0 : i32
    %c0_i32_0 = arith.constant 0 : i32
    %c0_i32_1 = arith.constant 0 : i32
    return %c0_i32, %c0_i32_0 : i32, i32
  }
  func.func @transform_10(%arg0: i32) -> (i32, i32) {
    %c0_i32 = arith.constant 0 : i32
    %c0_i32_0 = arith.constant 0 : i32
    %c0_i32_1 = arith.constant 0 : i32
    return %c0_i32, %c0_i32_0 : i32, i32
  }
  func.func @transform_11(%arg0: i32) -> (i32, i32) {
    %c0_i32 = arith.constant 0 : i32
    %c0_i32_0 = arith.constant 0 : i32
    return %c0_i32, %arg0 : i32, i32
  }
}

</mosaic_0001>

<bundles_post_ra>
// kernel: tpu_custom_call.1
= control target key start
LH: loop header
LB: loop body
LE: loop exit
PB: predicated region body
PF: predicated region fallthrough
CT: control target
= control target key end

     0   :  { %16 = vsyncpa [#allocation3], 0  ;;  %s2689_s0 = inlined_call_operand.hbm [shape: f32[16,512], index: 0, kind: input, shape index: {}]   ;;  %s2690_s1 = inlined_call_operand.hbm [shape: f32[9,512], index: 1, kind: input, shape index: {}]   ;;  %s2691_s2 = inlined_call_operand.vmem [shape: bf16[16,16], index: 2, kind: input, shape index: {}]   ;;  %s2692_s3 = inlined_call_operand.vmem [shape: f32[16,9], index: 3, kind: input, shape index: {}]   ;;  %s2693_s4 = inlined_call_operand.vmem [shape: f32[16,1], index: 4, kind: input, shape index: {}]   ;;  %s2694_s5 = inlined_call_operand.vmem [shape: f32[16,1], index: 5, kind: input, shape index: {}]   ;;  %s2695_s6 = inlined_call_operand.vmem [shape: bf16[8,16], index: 6, kind: input, shape index: {}]   ;;  %s2696_s7 = inlined_call_operand.vmem [shape: bf16[8,16], index: 7, kind: input, shape index: {}]   ;;  %s2697_s8 = inlined_call_operand.vmem [shape: f32[8,9], index: 8, kind: input, shape index: {}]   ;;  %s2698_s9 = inlined_call_operand.vmem [shape: f32[8,1], index: 9, kind: input, shape index: {}]   ;;  %s2699_s10 = inlined_call_operand.vmem [shape: f32[8,1], index: 10, kind: input, shape index: {}]   ;;  %s2700_s11 = inlined_call_operand.hbm [shape: f32[16,512], index: 11, kind: output, shape index: {}]  }
   0x1   :  { %17 = vsyncpa [#allocation6], 0 }
   0x2   :  { %18 = vsyncpa [#allocation4], 0  ;;  %s1491_s17 = smov [#allocation2]   ;;  %s1419_s21 = scalar_lea.hbm %s2689_s0, 1024 }
   0x3   :  { %s24_s18 = sshll.u32 %s1491_s17, 4  ;;  %p1420_p0 = scmp.ne.s32.totalorder %s2689_s0, %s1419_s21  ;;  %s25_s18 = int_to_ptr.vmem [resolvable:$true] %s24_s18 }
   0x4   :  { %p1423_p1 = scmp.lt.u32.totalorder %s1419_s21, %s2689_s0 }
   0x6   :  { %p1425_p2 = pnand %p1423_p1, %p1420_p0 }
   0x8   :  { %1428 = shalt.err (!%p1425_p2)
}
   0x9   :  { %s1429_s26 = scalar_lea.vmem %s25_s18, 1024  ;;  %p1434_p4 = scmp.lt.s32.totalorder %s25_s18, %s25_s18 }
   0xa   :  { %p1430_p3 = scmp.ne.s32.totalorder %s25_s18, %s1429_s26  ;;  %p1435_p5 = scmp.lt.s32.totalorder %s1429_s26, %s1429_s26 }
   0xc   :  { %p1436_p6 = por %p1435_p5, %p1434_p4 }
   0xe   :  { %p1437_p7 = pnand %p1436_p6, %p1430_p3 }
  0x10   :  { %1440 = shalt.err (!%p1437_p7)
}
  0x11   :  { %s1492_s27 = smov 512   ;;  %s1493_s28 = smov 32  }
  0x12   :  { %30 = dma.hbm_to_vmem [thread:$0]  %s2689_s0, 1024, %s25_s18, [#allocation3], %s1492_s27, %s1492_s27, %s1493_s28  }
  0x13   :  { %s1494_s12 = smov [#allocation5]   ;;  %s1441_s16 = scalar_lea.hbm %s2690_s1, 1024 }
  0x14   :  { %s36_s13 = sshll.u32 %s1494_s12, 4  ;;  %p1442_p8 = scmp.ne.s32.totalorder %s2690_s1, %s1441_s16  ;;  %s37_s13 = int_to_ptr.vmem [resolvable:$true] %s36_s13 }
  0x15   :  { %p1445_p9 = scmp.lt.u32.totalorder %s1441_s16, %s2690_s1 }
  0x17   :  { %p1447_p10 = pnand %p1445_p9, %p1442_p8 }
  0x19   :  { %1450 = shalt.err (!%p1447_p10)
}
  0x1a   :  { %s1451_s22 = scalar_lea.vmem %s37_s13, 1024  ;;  %p1456_p12 = scmp.lt.s32.totalorder %s37_s13, %s37_s13 }
  0x1b   :  { %p1452_p11 = scmp.ne.s32.totalorder %s37_s13, %s1451_s22  ;;  %p1457_p13 = scmp.lt.s32.totalorder %s1451_s22, %s1451_s22 }
  0x1d   :  { %p1458_p0 = por %p1457_p13, %p1456_p12 }
  0x1f   :  { %p1459_p1 = pnand %p1458_p0, %p1452_p11 }
  0x21   :  { %1462 = shalt.err (!%p1459_p1)
}
  0x22   :  { %42 = dma.hbm_to_vmem [thread:$0]  %s2690_s1, 1024, %s37_s13, [#allocation6], %s1492_s27, %s1492_s27, %s1493_s28  }
  0x23   :  { %1485 = dma.done.wait [#allocation3], 1024  }
  0x24   :  { %1486 = vsyncadd [#allocation3], 4294966272 }
  0x25   :  { %1487 = dma.done.wait [#allocation6], 1024  }
  0x26   :  { %1488 = vsyncadd [#allocation6], 4294966272  ;;  %v2701_v0 = vmov 0   ;;  %v1496_v1 = vmov 1   ;;  %v1497_v2 = vmov 4   ;;  %v69_v3 = vld [vmem:[#allocation2 + $0x8] sm:$0xff] }
  0x27   :  { %135 = vmatprep.mubr.bf16.mxu0 %v2701_v0  ;;  %178 = vmatprep.mubr.bf16.mxu1 %v2701_v0  ;;  %v73_v4 = vld [vmem:[#allocation2 + $0x28] sm:$0xff]  ;;  %v71_v5 = vld [vmem:[#allocation2 + $0x18] sm:$0xff]  ;;  %v68_v8 = vld [vmem:[#allocation2] sm:$0xff]  ;;  %vm99_vm0 = vcmask 130048   ;;  %v2707_v18 = vmov 2   ;;  %v2708_v19 = vmov 3  }
  0x28   :  { %1385 = vset.pattern.permute.xlu0 %v1496_v1  ;;  %1383 = vset.pattern.permute.xlu1 %v1497_v2  ;;  %v79_v6 = vpack.c.bf16 %v73_v4, %v69_v3  ;;  %v75_v7 = vld [vmem:[#allocation2 + $0x38] sm:$0xff]  ;;  %v72_v9 = vld [vmem:[#allocation2 + $0x20] sm:$0xff]  ;;  %v70_v12 = vld [vmem:[#allocation2 + $0x10] sm:$0xff]  ;;  %v2706_v20 = vmov 5   ;;  %v2705_v21 = vmov 6   ;;  %v2704_v22 = vmov 7  }
  0x29   :  { %v81_v10 = vpack.c.bf16 %v75_v7, %v71_v5  ;;  %v78_v11 = vpack.c.bf16 %v72_v9, %v68_v8  ;;  %v74_v13 = vld [vmem:[#allocation2 + $0x30] sm:$0xff]  ;;  %v1410_v15 = vld [vmem:[%s2691_s2] sm:$0xff]   ;;  %v198_v17 = vld [vmem:[%s2692_s3 + $0x8] sm:$0xff]  ;;  %v2703_v23 = vmov 8   ;;  %s1505_s13 = smov 16   ;;  %s1506_s14 = smov 1  }
  0x2a   :  { %103 = vmatprep.subr.bf16.mxu0 %v79_v6  ;;  %v80_v14 = vpack.c.bf16 %v74_v13, %v70_v12  ;;  %v197_v16 = vld [vmem:[%s2692_s3] sm:$0xff]  ;;  %v83_v25 = vld [vmem:[%s2693_s4 + $0x8] sm:$0xff]  ;;  %s1507_s15 = smov 113   ;;  %s1508_s16 = smov 15  }
  0x2b   :  { %146 = vmatprep.subr.bf16.mxu1 %v81_v10  ;;  %104 = vmatpush1.bf16.msra.mxu0 %v78_v11  ;;  %v82_v24 = vld [vmem:[%s2693_s4] sm:$0xff]  ;;  %s1504_s4 = smov 17   ;;  %s1509_s17 = smov 127   ;;  %v859_v10 = vld [vmem:[%s2694_s5 + $0x8] sm:$0xff] }
  0x2c   :  { %147 = vmatpush1.bf16.msra.mxu1 %v80_v14  ;;  %355 = vperm.xlu0 %1385, %v197_v16   ;;  %s1510_s19 = smov 112   ;;  %s1511_s20 = smov 111   ;;  %v233_v14 = vlaneseq }
  0x2d   :  { %201 = vperm.xlu1 %1383, %v197_v16  }
  0x2e   :  { %1355 = vmatmul.mubr.msk.bf16.vlgmr.msra.gmra.mrb[0].mxu0 %vm99_vm0, %v1410_v15 }
  0x2f   :  { %1356 = vmatmul.mubr.msk.bf16.vlgmr.msra.gmra.mrb[0].mxu1 %vm99_vm0, %v1410_v15  ;;  %931 = vmatprep.mubr.bf16.mxu0 %v2701_v0  ;;  %v1821_v15 = vand.u32 127, %v233_v14 }
  0x30   :  { %1388 = vset.pattern.permute.xlu0 %v2707_v18  ;;  %972 = vmatprep.mubr.bf16.mxu1 %v2701_v0 }
  0x31   :  { %439 = vperm.xlu0 %1388, %v198_v17   ;;  %206 = vperm.xlu1 %1383, %v198_v17   ;;  %vm314_vm1 = vcmp.lt.s32.totalorder %v1821_v15, 16  ;;  %vm474_vm2 = vcmp.lt.s32.totalorder %v1821_v15, 1  ;;  %vm634_vm3 = vcmp.lt.s32.totalorder %v1821_v15, 113  ;;  %vm235_vm4 = vcmp.lt.s32.totalorder %v1821_v15, 17 }
  0x32   :  { %vm394_vm5 = vcmp.lt.s32.totalorder %v1821_v15, 15  ;;  %vm554_vm6 = vcmp.lt.s32.totalorder %v1821_v15, 127  ;;  %vm714_vm7 = vcmp.lt.s32.totalorder %v1821_v15, 112  ;;  %vm794_vm8 = vcmp.lt.s32.totalorder %v1821_v15, 111 }
  0x35   :  { %1389 = vset.pattern.permute.xlu0 %v2708_v19  ;;  %1384 = vset.pattern.permute.xlu1 %v2701_v0 }
  0x36   :  { %515 = vperm.xlu0 %1389, %v197_v16   ;;  %279 = vperm.xlu1 %1384, %v198_v17  }
  0x3a   :  { %1392 = vset.pattern.permute.xlu0 %v2706_v20  ;;  %1386 = vset.pattern.permute.xlu1 %v1496_v1 }
  0x3b   :  { %599 = vperm.xlu0 %1392, %v198_v17   ;;  %359 = vperm.xlu1 %1386, %v198_v17  }
  0x3f   :  { %1393 = vset.pattern.permute.xlu0 %v2705_v21  ;;  %1387 = vset.pattern.permute.xlu1 %v2707_v18 }
  0x40   :  { %675 = vperm.xlu0 %1393, %v197_v16   ;;  %435 = vperm.xlu1 %1387, %v197_v16  }
  0x44   :  { %1396 = vset.pattern.permute.xlu0 %v2704_v22  ;;  %1390 = vset.pattern.permute.xlu1 %v2708_v19 }
  0x45   :  { %759 = vperm.xlu0 %1396, %v198_v17   ;;  %519 = vperm.xlu1 %1390, %v198_v17  }
  0x49   :  { %1397 = vset.pattern.permute.xlu0 %v2703_v23  ;;  %1391 = vset.pattern.permute.xlu1 %v2706_v20 }
  0x4a   :  { %835 = vperm.xlu0 %1397, %v197_v16   ;;  %595 = vperm.xlu1 %1391, %v197_v16  }
  0x4e   :  { %1398 = vset.pattern.permute.xlu0 %v2701_v0  ;;  %1394 = vset.pattern.permute.xlu1 %v2705_v21 }
  0x4f   :  { %86 = vperm.xlu0 %1398, %v82_v24   ;;  %679 = vperm.xlu1 %1394, %v198_v17  }
  0x53   :  { %91 = vperm.xlu0 %1398, %v83_v25   ;;  %1395 = vset.pattern.permute.xlu1 %v2704_v22 }
  0x54   :  { %755 = vperm.xlu1 %1395, %v197_v16  }
  0x57   :  { %275 = vperm.xlu0 %1398, %v197_v16  }
  0x58   :  { %1399 = vset.pattern.permute.xlu1 %v2703_v23 }
  0x59   :  { %839 = vperm.xlu1 %1399, %v198_v17  }
  0x5d   :  { %1400 = vset.pattern.permute.xlu1 %v2701_v0  ;;  %v324_v0 = vld [vmem:[#allocation5 + $0x1] ss:$8 sm:$0xf] }
  0xab   :  { %v1642_v26 = vpop.permute.xlu0 %355 }
  0xac   :  { %v1724_v55 = vpop.permute.xlu1 %201 }
  0xb0   :  { %v1644_v27 = vpop.permute.xlu0 %439  ;;  %v1734_v56 = vpop.permute.xlu1 %206 }
  0xb1   :  { %2764 = vst [vmem:[#allocation11_spill] sm:$0xff] %v1644_v27  ;;  %2774 = vst [vmem:[#allocation21_spill] sm:$0xff] %v1734_v56 }
  0xb5   :  { %v1646_v28 = vpop.permute.xlu0 %515  ;;  %v1740_v57 = vpop.permute.xlu1 %279 }
  0xb6   :  { %2775 = vst [vmem:[#allocation22_spill] sm:$0xff] %v1740_v57 }
  0xba   :  { %v1648_v29 = vpop.permute.xlu0 %599  ;;  %v1748_v59 = vpop.permute.xlu1 %359 }
  0xbb   :  { %2765 = vst [vmem:[#allocation12_spill] sm:$0xff] %v1648_v29  ;;  %2776 = vst [vmem:[#allocation23_spill] sm:$0xff] %v1748_v59 }
  0xbf   :  { %v1650_v30 = vpop.permute.xlu0 %675  ;;  %v1758_v62 = vpop.permute.xlu1 %435 }
  0xc4   :  { %v1652_v31 = vpop.permute.xlu0 %759  ;;  %v1768_v3 = vpop.permute.xlu1 %519 }
  0xc5   :  { %2766 = vst [vmem:[#allocation13_spill] sm:$0xff] %v1652_v31  ;;  %2779 = vst [vmem:[#allocation26_spill] sm:$0xff] %v1768_v3 }
  0xc9   :  { %v1654_v32 = vpop.permute.xlu0 %835  ;;  %v1776_v4 = vpop.permute.xlu1 %595 }
  0xca   :  { %2767 = vst [vmem:[#allocation14_spill] sm:$0xff] %v1654_v32 }
  0xce   :  { %v87_v33 = vpop.permute.xlu0 %86  ;;  %v1784_v5 = vpop.permute.xlu1 %679 }
  0xcf   :  { %2780 = vst [vmem:[#allocation27_spill] sm:$0xff] %v1784_v5  ;;  %v244_v5 = vld [vmem:[#allocation5] ss:$8 sm:$0xf] }
  0xd2   :  { %v92_v50 = vpop.permute.xlu0 %91 }
  0xd3   :  { %v1792_v6 = vpop.permute.xlu1 %755 }
  0xd4   :  { %2781 = vst [vmem:[#allocation28_spill] sm:$0xff] %v1792_v6 }
  0xd6   :  { %v1804_v8 = vpop.permute.xlu0 %275 }
  0xd8   :  { %v1800_v7 = vpop.permute.xlu1 %839 }
  0xd9   :  { %2782 = vst [vmem:[#allocation29_spill] sm:$0xff] %v1800_v7 }
 0x101   :  { %v137_v34 = vpop.f32.mrb[0].mxu0 }
 0x102   :  { %v138_v35 = vadd.f32 %v137_v34, %v87_v33  ;;  %v180_v36 = vpop.f32.mrb[0].mxu1  ;;  %v139_v37 = vpop.f32.mrb[1].mxu0 }
 0x103   :  { %v181_v38 = vadd.f32 %v180_v36, %v87_v33  ;;  %v182_v39 = vpop.f32.mrb[1].mxu1  ;;  %v141_v40 = vpop.f32.mrb[2].mxu0  ;;  %v140_v46 = vadd.f32 %v139_v37, %v87_v33 }
 0x104   :  { %v1656_v41 = vmax.f32 %v138_v35, 0.0  ;;  %v184_v42 = vpop.f32.mrb[2].mxu1  ;;  %v143_v43 = vpop.f32.mrb[3].mxu0  ;;  %v183_v48 = vadd.f32 %v182_v39, %v87_v33  ;;  %v142_v51 = vadd.f32 %v141_v40, %v92_v50  ;;  %v858_v39 = vld [vmem:[%s2694_s5] sm:$0xff] }
 0x105   :  { %v1658_v44 = vmax.f32 %v181_v38, 0.0  ;;  %v186_v45 = vpop.f32.mrb[3].mxu1  ;;  %v1672_v47 = vmax.f32 %v140_v46, 0.0  ;;  %v185_v53 = vadd.f32 %v184_v42, %v92_v50  ;;  %v144_v58 = vadd.f32 %v143_v43, %v92_v50 }
 0x106   :  { %2768 = vst [vmem:[#allocation15_spill] sm:$0xff] %v1656_v41  ;;  %217 = vrot.lane.b32.xlu1 %v1656_v41, %s1504_s4  ;;  %v1678_v49 = vmax.f32 %v183_v48, 0.0  ;;  %v1700_v52 = vmax.f32 %v142_v51, 0.0  ;;  %v187_v61 = vadd.f32 %v186_v45, %v92_v50  ;;  %v1066_v45 = vld [vmem:[%s2698_s9] sm:$0xff]  ;;  %v1924_v18 = vmul.f32 %v1724_v55, %v1656_v41 }
 0x107   :  { %2769 = vst [vmem:[#allocation16_spill] sm:$0xff] %v1658_v44  ;;  %306 = vrot.lane.b32.xlu0 %v1658_v44, %s1505_s13  ;;  %2770 = vst [vmem:[#allocation17_spill] sm:$0xff] %v1672_v47  ;;  %v1706_v54 = vmax.f32 %v185_v53, 0.0  ;;  %v1752_v60 = vmax.f32 %v144_v58, 0.0  ;;  %v211_v19 = vmul.f32 %v1724_v55, %v1658_v44 }
 0x108   :  { %2771 = vst [vmem:[#allocation18_spill] sm:$0xff] %v1678_v49  ;;  %2772 = vst [vmem:[#allocation19_spill] sm:$0xff] %v1700_v52  ;;  %v1760_v63 = vmax.f32 %v187_v61, 0.0  ;;  %v1932_v7 = vmul.f32 %v1724_v55, %v1678_v49 }
 0x109   :  { %2773 = vst [vmem:[#allocation20_spill] sm:$0xff] %v1706_v54  ;;  %2777 = vst [vmem:[#allocation24_spill] sm:$0xff] %v1752_v60 }
 0x10a   :  { %225 = vrot.lane.b32.xlu1 %v1658_v44, %s1504_s4  ;;  %2778 = vst [vmem:[#allocation25_spill] sm:$0xff] %v1760_v63 }
 0x10b   :  { %466 = vrot.lane.b32.xlu0 %v1658_v44, %s1506_s14 }
 0x10e   :  { %298 = vrot.lane.b32.xlu1 %v1656_v41, %s1505_s13 }
 0x10f   :  { %626 = vrot.lane.b32.xlu0 %v1658_v44, %s1507_s15 }
 0x112   :  { %378 = vrot.lane.b32.xlu1 %v1656_v41, %s1508_s16 }
 0x113   :  { %302 = vrot.lane.b32.xlu0 %v1672_v47, %s1505_s13 }
 0x116   :  { %386 = vrot.lane.b32.xlu1 %v1658_v44, %s1508_s16 }
 0x117   :  { %310 = vrot.lane.b32.xlu0 %v1678_v49, %s1505_s13 }
 0x11a   :  { %458 = vrot.lane.b32.xlu1 %v1656_v41, %s1506_s14 }
 0x11b   :  { %462 = vrot.lane.b32.xlu0 %v1672_v47, %s1506_s14 }
 0x11e   :  { %538 = vrot.lane.b32.xlu1 %v1656_v41, %s1509_s17 }
 0x11f   :  { %470 = vrot.lane.b32.xlu0 %v1678_v49, %s1506_s14 }
 0x122   :  { %546 = vrot.lane.b32.xlu1 %v1658_v44, %s1509_s17 }
 0x123   :  { %622 = vrot.lane.b32.xlu0 %v1672_v47, %s1507_s15 }
 0x126   :  { %618 = vrot.lane.b32.xlu1 %v1656_v41, %s1507_s15 }
 0x127   :  { %630 = vrot.lane.b32.xlu0 %v1678_v49, %s1507_s15 }
 0x12a   :  { %698 = vrot.lane.b32.xlu1 %v1656_v41, %s1510_s19 }
 0x12b   :  { %219 = vrot.lane.b32.xlu0 %v1700_v52, %s1504_s4 }
 0x12e   :  { %706 = vrot.lane.b32.xlu1 %v1658_v44, %s1510_s19 }
 0x12f   :  { %227 = vrot.lane.b32.xlu0 %v1706_v54, %s1504_s4 }
 0x132   :  { %778 = vrot.lane.b32.xlu1 %v1656_v41, %s1511_s20 }
 0x133   :  { %380 = vrot.lane.b32.xlu0 %v1700_v52, %s1508_s16 }
 0x136   :  { %786 = vrot.lane.b32.xlu1 %v1658_v44, %s1511_s20  ;;  %v644_v44 = vld [vmem:[#allocation5 + $0x6] ss:$8 sm:$0xf] }
 0x137   :  { %388 = vrot.lane.b32.xlu0 %v1706_v54, %s1508_s16 }
 0x13a   :  { %221 = vrot.lane.b32.xlu1 %v1672_v47, %s1504_s4 }
 0x13b   :  { %540 = vrot.lane.b32.xlu0 %v1700_v52, %s1509_s17 }
 0x13e   :  { %229 = vrot.lane.b32.xlu1 %v1678_v49, %s1504_s4 }
 0x13f   :  { %548 = vrot.lane.b32.xlu0 %v1706_v54, %s1509_s17 }
 0x142   :  { %382 = vrot.lane.b32.xlu1 %v1672_v47, %s1508_s16 }
 0x143   :  { %700 = vrot.lane.b32.xlu0 %v1700_v52, %s1510_s19 }
 0x146   :  { %390 = vrot.lane.b32.xlu1 %v1678_v49, %s1508_s16 }
 0x147   :  { %708 = vrot.lane.b32.xlu0 %v1706_v54, %s1510_s19 }
 0x14a   :  { %542 = vrot.lane.b32.xlu1 %v1672_v47, %s1509_s17 }
 0x14b   :  { %780 = vrot.lane.b32.xlu0 %v1700_v52, %s1511_s20 }
 0x14e   :  { %550 = vrot.lane.b32.xlu1 %v1678_v49, %s1509_s17 }
 0x14f   :  { %788 = vrot.lane.b32.xlu0 %v1706_v54, %s1511_s20 }
 0x152   :  { %702 = vrot.lane.b32.xlu1 %v1672_v47, %s1510_s19 }
 0x153   :  { %223 = vrot.lane.b32.xlu0 %v1752_v60, %s1504_s4 }
 0x156   :  { %710 = vrot.lane.b32.xlu1 %v1678_v49, %s1510_s19 }
 0x157   :  { %231 = vrot.lane.b32.xlu0 %v1760_v63, %s1504_s4 }
 0x15a   :  { %782 = vrot.lane.b32.xlu1 %v1672_v47, %s1511_s20 }
 0x15b   :  { %384 = vrot.lane.b32.xlu0 %v1752_v60, %s1508_s16 }
 0x15e   :  { %790 = vrot.lane.b32.xlu1 %v1678_v49, %s1511_s20 }
 0x15f   :  { %392 = vrot.lane.b32.xlu0 %v1760_v63, %s1508_s16 }
 0x162   :  { %300 = vrot.lane.b32.xlu1 %v1700_v52, %s1505_s13 }
 0x163   :  { %544 = vrot.lane.b32.xlu0 %v1752_v60, %s1509_s17 }
 0x166   :  { %308 = vrot.lane.b32.xlu1 %v1706_v54, %s1505_s13 }
 0x167   :  { %552 = vrot.lane.b32.xlu0 %v1760_v63, %s1509_s17 }
 0x16a   :  { %460 = vrot.lane.b32.xlu1 %v1700_v52, %s1506_s14 }
 0x16b   :  { %704 = vrot.lane.b32.xlu0 %v1752_v60, %s1510_s19 }
 0x16e   :  { %468 = vrot.lane.b32.xlu1 %v1706_v54, %s1506_s14 }
 0x16f   :  { %712 = vrot.lane.b32.xlu0 %v1760_v63, %s1510_s19 }
 0x172   :  { %620 = vrot.lane.b32.xlu1 %v1700_v52, %s1507_s15 }
 0x173   :  { %784 = vrot.lane.b32.xlu0 %v1752_v60, %s1511_s20 }
 0x176   :  { %628 = vrot.lane.b32.xlu1 %v1706_v54, %s1507_s15  ;;  %v404_v54 = vld [vmem:[#allocation5 + $0x2] ss:$8 sm:$0xf] }
 0x177   :  { %792 = vrot.lane.b32.xlu0 %v1760_v63, %s1511_s20 }
 0x178   :  { %v1810_v9 = vpop.permute.xlu1 %217 }
 0x179   :  { %v307_v11 = vpop.permute.xlu0 %306 }
 0x17a   :  { %304 = vrot.lane.b32.xlu1 %v1752_v60, %s1505_s13 }
 0x17b   :  { %867 = vperm.xlu0 %1398, %v859_v10  }
 0x17c   :  { %v1817_v12 = vpop.permute.xlu1 %225 }
 0x17d   :  { %v467_v13 = vpop.permute.xlu0 %466 }
 0x17e   :  { %312 = vrot.lane.b32.xlu1 %v1760_v63, %s1505_s13 }
 0x17f   :  { %1402 = vset.pattern.permute.xlu0 %v1496_v1 }
 0x180   :  { %v1824_v16 = vpop.permute.xlu1 %298 }
 0x181   :  { %v627_v17 = vpop.permute.xlu0 %626 }
 0x182   :  { %464 = vrot.lane.b32.xlu1 %v1752_v60, %s1506_s14 }
 0x184   :  { %v1829_v24 = vpop.permute.xlu1 %378 }
 0x185   :  { %v303_v25 = vpop.permute.xlu0 %302 }
 0x186   :  { %v1833_v33 = vsel %vm314_vm1, %v303_v25, %v307_v11  ;;  %472 = vrot.lane.b32.xlu1 %v1760_v63, %s1506_s14 }
 0x188   :  { %v1837_v34 = vpop.permute.xlu1 %386 }
 0x189   :  { %v1839_v1 = vpop.permute.xlu0 %310 }
 0x18a   :  { %v1844_v35 = vsel %vm314_vm1, %v307_v11, %v1839_v1  ;;  %624 = vrot.lane.b32.xlu1 %v1752_v60, %s1507_s15  ;;  %v247_v11 = vshrl.u32 %v233_v14, 7  ;;  %v484_v14 = vld [vmem:[#allocation5 + $0x3] ss:$8 sm:$0xf]  ;;  %v321_v60 = vsel %vm314_vm1, %v1839_v1, %v1824_v16 }
 0x18c   :  { %v1849_v36 = vpop.permute.xlu1 %458  ;;  %v1905_v23 = vsub.s32 2, %v247_v11  ;;  %v1907_v22 = vsub.s32 0, %v247_v11 }
 0x18d   :  { %v1851_v37 = vpop.permute.xlu0 %462 }
 0x18e   :  { %v1856_v38 = vsel %vm474_vm2, %v1851_v37, %v467_v13  ;;  %632 = vrot.lane.b32.xlu1 %v1760_v63, %s1507_s15  ;;  %2786 = vst [vmem:[#allocation33_spill] sm:$0xff] %v1907_v22  ;;  %v1938_v3 = vrot.slane %v324_v0, %v1905_v23  ;;  %v1941_v41 = vrot.slane %v324_v0, %v1907_v22 }
 0x18f   :  { %v1958_v27 = vrot.slane %v484_v14, %v1907_v22 }
 0x190   :  { %v1863_v40 = vpop.permute.xlu1 %538  ;;  %2790 = vst [vmem:[#allocation37_spill] sm:$0xff] %v1938_v3  ;;  %2791 = vst [vmem:[#allocation38_spill] sm:$0xff] %v1941_v41  ;;  %v348_v56 = vmul.f32 %v1938_v3, %v1833_v33 }
 0x191   :  { %v1865_v42 = vpop.permute.xlu0 %470 }
 0x192   :  { %v1870_v43 = vsel %vm474_vm2, %v467_v13, %v1865_v42  ;;  %862 = vperm.xlu1 %1400, %v858_v39  }
 0x194   :  { %v1876_v46 = vpop.permute.xlu1 %546 }
 0x195   :  { %v1878_v48 = vpop.permute.xlu0 %622 }
 0x196   :  { %v1883_v50 = vsel %vm634_vm3, %v1878_v48, %v627_v17  ;;  %1069 = vperm.xlu1 %1400, %v1066_v45   ;;  %v1903_v45 = vsub.s32 1, %v247_v11 }
 0x198   :  { %v1885_v51 = vpop.permute.xlu1 %618  ;;  %v1935_v31 = vrot.slane %v324_v0, %v1903_v45  ;;  %v1955_v49 = vrot.slane %v484_v14, %v1903_v45  ;;  %v1969_v52 = vrot.slane %v244_v5, %v1903_v45  ;;  %v2015_v3 = vrot.slane %v404_v54, %v1903_v45 }
 0x199   :  { %v1887_v53 = vpop.permute.xlu0 %630 }
 0x19a   :  { %v1892_v58 = vsel %vm634_vm3, %v627_v17, %v1887_v53  ;;  %1401 = vset.pattern.permute.xlu1 %v1497_v2  ;;  %v1909_v17 = vsub.s32 3, %v247_v11  ;;  %v1916_v2 = vld [vmem:[%s2697_s8] sm:$0xff]  ;;  %v210_v11 = vmul.f32 %v1724_v55, %v1672_v47  ;;  %2789 = vst [vmem:[#allocation36_spill] sm:$0xff] %v1935_v31  ;;  %v1947_v47 = vrot.slane %v484_v14, %v1905_v23 }
 0x19b   :  { %1079 = vperm.xlu1 %1401, %v1916_v2   ;;  %1131 = vperm.xlu0 %1402, %v1916_v2   ;;  %v319_v55 = vsel %vm314_vm1, %v1824_v16, %v303_v25  ;;  %2797 = vst [vmem:[#allocation42_spill] sm:$0xff] %v1969_v52  ;;  %v1972_v25 = vrot.slane %v244_v5, %v1905_v23  ;;  %2802 = vst [vmem:[#allocation47_spill] sm:$0xff] %v2015_v3 }
 0x19c   :  { %v1895_v61 = vpop.permute.xlu1 %698  ;;  %v1944_v29 = vrot.slane %v324_v0, %v1909_v17  ;;  %v2795_v0 = vmov 3   ;;  %v1965_v63 = vrot.slane %v484_v14, %v1909_v17  ;;  %v1983_v14 = vrot.slane %v644_v44, %v1907_v22 }
 0x19d   :  { %2783 = vst [vmem:[#allocation30_spill] sm:$0xff] %v1895_v61  ;;  %v1897_v10 = vpop.permute.xlu0 %219  ;;  %2798 = vst [vmem:[#allocation43_spill] sm:$0xff] %v1972_v25  ;;  %v347_v61 = vmul.f32 %v1935_v31, %v319_v55  ;;  %v2009_v55 = vrot.slane %v244_v5, %v1909_v17  ;;  %v2018_v31 = vrot.slane %v404_v54, %v1905_v23 }
 0x19e   :  { %2784 = vst [vmem:[#allocation31_spill] sm:$0xff] %v1897_v10  ;;  %2792 = vst [vmem:[#allocation39_spill] sm:$0xff] %v1944_v29  ;;  %v1996_v10 = vrot.slane %v244_v5, %v1907_v22  ;;  %v2026_v5 = vrot.slane %v404_v54, %v1909_v17 }
 0x19f   :  { %1404 = vset.pattern.permute.xlu0 %v2795_v0  ;;  %v1986_v0 = vrot.slane %v644_v44, %v1909_v17  ;;  %2801 = vst [vmem:[#allocation46_spill] sm:$0xff] %v2009_v55  ;;  %2803 = vst [vmem:[#allocation48_spill] sm:$0xff] %v2018_v31 }
 0x1a0   :  { %v1899_v13 = vpop.permute.xlu1 %706  ;;  %1187 = vperm.xlu0 %1404, %v1916_v2   ;;  %2799 = vst [vmem:[#allocation44_spill] sm:$0xff] %v1996_v10 }
 0x1a1   :  { %v1901_v39 = vpop.permute.xlu0 %227 }
 0x1a2   :  { %2785 = vst [vmem:[#allocation32_spill] sm:$0xff] %v1901_v39  ;;  %v1998_v39 = vld [vmem:[#allocation5 + $0x5] ss:$8 sm:$0xf] }
 0x1a4   :  { %v1911_v21 = vpop.permute.xlu1 %778 }
 0x1a5   :  { %2787 = vst [vmem:[#allocation34_spill] sm:$0xff] %v1911_v21  ;;  %v1918_v20 = vpop.permute.xlu0 %380 }
 0x1a6   :  { %2788 = vst [vmem:[#allocation35_spill] sm:$0xff] %v1918_v20  ;;  %v2796_v20 = vmov 2  }
 0x1a7   :  { %1403 = vset.pattern.permute.xlu1 %v2796_v20  ;;  %v1980_v20 = vrot.slane %v644_v44, %v1905_v23 }
 0x1a8   :  { %v1949_v59 = vpop.permute.xlu1 %786  ;;  %1159 = vperm.xlu1 %1403, %v1916_v2  }
 0x1a9   :  { %2793 = vst [vmem:[#allocation40_spill] sm:$0xff] %v1949_v59  ;;  %v1960_v21 = vpop.permute.xlu0 %388  ;;  %v346_v59 = vmul.f32 %v1941_v41, %v321_v60 }
 0x1aa   :  { %2794 = vst [vmem:[#allocation41_spill] sm:$0xff] %v1960_v21  ;;  %v1977_v21 = vrot.slane %v644_v44, %v1903_v45 }
 0x1ac   :  { %v222_v57 = vpop.permute.xlu1 %221 }
 0x1ad   :  { %v2000_v32 = vpop.permute.xlu0 %540  ;;  %v238_v44 = vsel %vm235_vm4, %v222_v57, %v1817_v12  ;;  %v240_v33 = vsel %vm235_vm4, %v1810_v9, %v222_v57  ;;  %v2023_v57 = vrot.slane %v404_v54, %v1907_v22  ;;  %v479_v54 = vsel %vm474_vm2, %v1849_v36, %v1851_v37 }
 0x1ae   :  { %2800 = vst [vmem:[#allocation45_spill] sm:$0xff] %v2000_v32  ;;  %v267_v16 = vmul.f32 %v1969_v52, %v240_v33  ;;  %v268_v1 = vmul.f32 %v1972_v25, %v238_v44  ;;  %v2804_v32 = vmov 5   ;;  %v2030_v33 = vrot.slane %v1998_v39, %v1907_v22 }
 0x1af   :  { %1405 = vset.pattern.permute.xlu0 %v2804_v32  ;;  %2805 = vst [vmem:[#allocation49_spill] sm:$0xff] %v2023_v57  ;;  %v363_v44 = vmul.f32 %v1642_v26, %v347_v61  ;;  %v364_v25 = vmul.f32 %v1642_v26, %v348_v56  ;;  %v349_v52 = vmul.f32 %v1944_v29, %v1844_v35 }
 0x1b0   :  { %2806 = vst [vmem:[#allocation50_spill] sm:$0xff] %v2030_v33  ;;  %1215 = vperm.xlu0 %1405, %v1916_v2   ;;  %v283_v32 = vmul.f32 %v1804_v8, %v267_v16  ;;  %v284_v60 = vmul.f32 %v1804_v8, %v268_v1  ;;  %v230_v41 = vpop.permute.xlu1 %229  ;;  %v362_v37 = vmul.f32 %v1642_v26, %v346_v59 }
 0x1b1   :  { %v2043_v22 = vpop.permute.xlu0 %548  ;;  %v236_v61 = vsel %vm235_vm4, %v1817_v12, %v230_v41  ;;  %v242_v56 = vsel %vm235_vm4, %v230_v41, %v1810_v9  ;;  %v508_v29 = vmul.f32 %v1947_v47, %v1856_v38  ;;  %v481_v12 = vsel %vm474_vm2, %v1865_v42, %v1849_v36 }
 0x1b2   :  { %v291_v16 = vadd.f32 %v283_v32, %v210_v11  ;;  %v292_v1 = vadd.f32 %v284_v60, %v211_v19  ;;  %v266_v6 = vmul.f32 %v1996_v10, %v242_v56  ;;  %v269_v35 = vmul.f32 %v2009_v55, %v236_v61 }
 0x1b3   :  { %v2063_v41 = vrot.slane %v1998_v39, %v1903_v45  ;;  %v2808_v19 = vmov 6   ;;  %v365_v38 = vmul.f32 %v1642_v26, %v349_v52  ;;  %v507_v61 = vmul.f32 %v1955_v49, %v479_v54 }
 0x1b4   :  { %1406 = vset.pattern.permute.xlu0 %v2808_v19  ;;  %v282_v9 = vmul.f32 %v1804_v8, %v266_v6  ;;  %v285_v11 = vmul.f32 %v1804_v8, %v269_v35  ;;  %v371_v32 = vadd.f32 %v363_v44, %v291_v16  ;;  %v372_v59 = vadd.f32 %v364_v25, %v292_v1  ;;  %v383_v60 = vpop.permute.xlu1 %382 }
 0x1b5   :  { %2807 = vst [vmem:[#allocation51_spill] sm:$0xff] %v2063_v41  ;;  %1243 = vperm.xlu0 %1406, %v1916_v2   ;;  %v2071_v36 = vpop.permute.xlu0 %700  ;;  %v397_v42 = vsel %vm394_vm5, %v383_v60, %v1837_v34  ;;  %v399_v6 = vsel %vm394_vm5, %v1829_v24, %v383_v60  ;;  %v524_v52 = vmul.f32 %v1646_v28, %v508_v29 }
 0x1b6   :  { %v290_v8 = vadd.f32 %v282_v9, %v1924_v18  ;;  %v293_v25 = vadd.f32 %v285_v11, %v1932_v7  ;;  %v427_v44 = vmul.f32 %v2015_v3, %v399_v6  ;;  %v428_v26 = vmul.f32 %v2018_v31, %v397_v42 }
 0x1b7   :  { %v506_v54 = vmul.f32 %v1958_v27, %v481_v12  ;;  %v509_v56 = vmul.f32 %v1965_v63, %v1870_v43  ;;  %v2089_v16 = vrot.slane %v1998_v39, %v1905_v23  ;;  %v2810_v9 = vmov 7  }
 0x1b8   :  { %v443_v1 = vmul.f32 %v1758_v62, %v427_v44  ;;  %v444_v18 = vmul.f32 %v1758_v62, %v428_v26  ;;  %v373_v7 = vadd.f32 %v365_v38, %v293_v25  ;;  %v391_v35 = vpop.permute.xlu1 %390  ;;  %v370_v19 = vadd.f32 %v362_v37, %v290_v8 }
 0x1b9   :  { %2809 = vst [vmem:[#allocation52_spill] sm:$0xff] %v2089_v16  ;;  %1407 = vset.pattern.permute.xlu0 %v2810_v9  ;;  %v523_v29 = vmul.f32 %v1646_v28, %v507_v61  ;;  %v639_v43 = vsel %vm634_vm3, %v1885_v51, %v1878_v48  ;;  %v2099_v12 = vpop.permute.xlu0 %708  ;;  %v395_v11 = vsel %vm394_vm5, %v1837_v34, %v391_v35 }
 0x1ba   :  { %v401_v60 = vsel %vm394_vm5, %v391_v35, %v1829_v24  ;;  %1271 = vperm.xlu0 %1407, %v1916_v2   ;;  %v451_v37 = vadd.f32 %v443_v1, %v371_v32  ;;  %v452_v38 = vadd.f32 %v444_v18, %v372_v59  ;;  %v429_v42 = vmul.f32 %v2026_v5, %v395_v11 }
 0x1bb   :  { %v426_v61 = vmul.f32 %v2023_v57, %v401_v60  ;;  %v522_v48 = vmul.f32 %v1646_v28, %v506_v54  ;;  %v525_v6 = vmul.f32 %v1646_v28, %v509_v56  ;;  %v667_v8 = vmul.f32 %v1977_v21, %v1883_v50 }
 0x1bc   :  { %v2116_v34 = vrot.slane %v1998_v39, %v1909_v17  ;;  %v445_v32 = vmul.f32 %v1758_v62, %v429_v42  ;;  %v531_v59 = vadd.f32 %v523_v29, %v451_v37  ;;  %v543_v25 = vpop.permute.xlu1 %542  ;;  %v532_v44 = vadd.f32 %v524_v52, %v452_v38 }
 0x1bd   :  { %v442_v24 = vmul.f32 %v1758_v62, %v426_v61  ;;  %v641_v26 = vsel %vm634_vm3, %v1887_v53, %v1885_v51  ;;  %v666_v28 = vmul.f32 %v1983_v14, %v639_v43  ;;  %v2125_v54 = vpop.permute.xlu0 %780  ;;  %v557_v50 = vsel %vm554_vm6, %v543_v25, %v1876_v46 }
 0x1be   :  { %v559_v62 = vsel %vm554_vm6, %v1863_v40, %v543_v25  ;;  %v2811_v39 = vmov 8   ;;  %v453_v56 = vadd.f32 %v445_v32, %v373_v7  ;;  %v587_v51 = vmul.f32 %v2063_v41, %v557_v50 }
 0x1bf   :  { %1408 = vset.pattern.permute.xlu0 %v2811_v39  ;;  %v450_v52 = vadd.f32 %v442_v24, %v370_v19  ;;  %v586_v1 = vmul.f32 %v2030_v33, %v559_v62  ;;  %v683_v53 = vmul.f32 %v1650_v30, %v667_v8  ;;  %v668_v18 = vmul.f32 %v1980_v20, %v1892_v58 }
 0x1c0   :  { %1299 = vperm.xlu0 %1408, %v1916_v2   ;;  %v603_v29 = vmul.f32 %v1776_v4, %v587_v51  ;;  %v533_v43 = vadd.f32 %v525_v6, %v453_v56  ;;  %v551_v11 = vpop.permute.xlu1 %550  ;;  %v669_v7 = vmul.f32 %v1986_v0, %v641_v26  ;;  %v682_v19 = vmul.f32 %v1650_v30, %v666_v28  ;;  %v804_v56 = vld [vmem:[#allocation5 + $0x20] ss:$8 sm:$0xf] }
 0x1c1   :  { %v530_v35 = vadd.f32 %v522_v48, %v450_v52  ;;  %v602_v9 = vmul.f32 %v1776_v4, %v586_v1  ;;  %v555_v60 = vsel %vm554_vm6, %v1876_v46, %v551_v11  ;;  %v561_v37 = vsel %vm554_vm6, %v551_v11, %v1863_v40  ;;  %v2152_v48 = vld [vmem:[#allocation5 + $0x7] ss:$8 sm:$0xf]  ;;  %v2155_v8 = vpop.permute.xlu0 %788 }
 0x1c2   :  { %v611_v38 = vadd.f32 %v603_v29, %v531_v59  ;;  %v588_v61 = vmul.f32 %v2089_v16, %v555_v60  ;;  %v589_v42 = vmul.f32 %v2116_v34, %v561_v37  ;;  %v2812_v6 = vmov 0   ;;  %v2816_v29 = vld [vmem:[#allocation40_spill] sm:$0xff] }
 0x1c3   :  { %v610_v58 = vadd.f32 %v602_v9, %v530_v35  ;;  %v684_v25 = vmul.f32 %v1650_v30, %v668_v18  ;;  %v2166_v26 = vrot.slane %v2152_v48, %v1903_v45  ;;  %v685_v28 = vmul.f32 %v1650_v30, %v669_v7  ;;  %v2815_v35 = vld [vmem:[#allocation28_spill] sm:$0xff] }
 0x1c4   :  { %1409 = vset.pattern.permute.xlu0 %v2812_v6  ;;  %v604_v46 = vmul.f32 %v1776_v4, %v588_v61  ;;  %v605_v40 = vmul.f32 %v1776_v4, %v589_v42  ;;  %v691_v24 = vadd.f32 %v683_v53, %v611_v38  ;;  %v703_v32 = vpop.permute.xlu1 %702  ;;  %v2177_v53 = vrot.slane %v2152_v48, %v1905_v23  ;;  %v2824_v6 = vld [vmem:[#allocation22_spill] sm:$0xff] }
 0x1c5   :  { %1103 = vperm.xlu0 %1409, %v1916_v2   ;;  %v2161_v59 = vadd.f32 %v682_v19, %v610_v58  ;;  %v717_v2 = vsel %vm714_vm7, %v703_v32, %v1899_v13  ;;  %v224_v1 = vpop.permute.xlu0 %223  ;;  %v2193_v60 = vrot.slane %v804_v56, %v1905_v23 }
 0x1c6   :  { %v612_v50 = vadd.f32 %v604_v46, %v532_v44  ;;  %v613_v62 = vadd.f32 %v605_v40, %v533_v43  ;;  %v747_v51 = vmul.f32 %v2166_v26, %v717_v2  ;;  %v2184_v44 = vrot.slane %v804_v56, %v1903_v45  ;;  %v2817_v45 = vld [vmem:[#allocation14_spill] sm:$0xff] }
 0x1c7   :  { %2813 = vst [vmem:[#allocation53_spill] sm:$0xff] %v2161_v59 }
 0x1c8   :  { %v692_v39 = vadd.f32 %v684_v25, %v612_v50  ;;  %v2172_v4 = vadd.f32 %v685_v28, %v613_v62  ;;  %v711_v52 = vpop.permute.xlu1 %710  ;;  %v763_v9 = vmul.f32 %v2815_v35, %v747_v51 }
 0x1c9   :  { %v715_v30 = vsel %vm714_vm7, %v1899_v13, %v711_v52  ;;  %v232_v7 = vpop.permute.xlu0 %231 }
 0x1ca   :  { %2814 = vst [vmem:[#allocation54_spill] sm:$0xff] %v2172_v4  ;;  %v748_v11 = vmul.f32 %v2177_v53, %v715_v30  ;;  %v771_v13 = vadd.f32 %v763_v9, %v691_v24  ;;  %v2820_v30 = vld [vmem:[#allocation32_spill] sm:$0xff] }
 0x1cb   :  { %v239_v9 = vsel %vm235_vm4, %v224_v1, %v2820_v30 }
 0x1cc   :  { %v783_v18 = vpop.permute.xlu1 %782  ;;  %v764_v38 = vmul.f32 %v2815_v35, %v748_v11  ;;  %v2263_v35 = vrot.slane %v804_v56, %v1909_v17 }
 0x1cd   :  { %v797_v43 = vsel %vm794_vm8, %v783_v18, %v2816_v29  ;;  %v385_v25 = vpop.permute.xlu0 %384 }
 0x1ce   :  { %v827_v19 = vmul.f32 %v2184_v44, %v797_v43  ;;  %v772_v23 = vadd.f32 %v764_v38, %v692_v39  ;;  %v237_v39 = vsel %vm235_vm4, %v2820_v30, %v232_v7  ;;  %v2823_v38 = vld [vmem:[#allocation43_spill] sm:$0xff]  ;;  %v2825_v30 = vld [vmem:[#allocation33_spill] sm:$0xff] }
 0x1cf   :  { %v2235_v4 = vrot.slane %v2152_v48, %v2825_v30 }
 0x1d0   :  { %v2195_v37 = vpop.permute.xlu1 %790  ;;  %v843_v58 = vmul.f32 %v2817_v45, %v827_v19 }
 0x1d1   :  { %v795_v61 = vsel %vm794_vm8, %v2816_v29, %v2195_v37  ;;  %v393_v62 = vpop.permute.xlu0 %392  ;;  %v2821_v29 = vld [vmem:[#allocation31_spill] sm:$0xff] }
 0x1d2   :  { %v2203_v42 = vadd.f32 %v843_v58, %v771_v13  ;;  %v828_v46 = vmul.f32 %v2193_v60, %v795_v61  ;;  %v241_v43 = vsel %vm235_vm4, %v2821_v29, %v224_v1  ;;  %v243_v19 = vsel %vm235_vm4, %v232_v7, %v2821_v29  ;;  %v2822_v13 = vld [vmem:[#allocation42_spill] sm:$0xff]  ;;  %v2826_v29 = vld [vmem:[#allocation24_spill] sm:$0xff] }
 0x1d3   :  { %v271_v58 = vmul.f32 %v2822_v13, %v241_v43  ;;  %v272_v61 = vmul.f32 %v2823_v38, %v239_v9  ;;  %v2827_v43 = vld [vmem:[#allocation21_spill] sm:$0xff]  ;;  %v2828_v38 = vld [vmem:[#allocation30_spill] sm:$0xff] }
 0x1d4   :  { %2818 = vst [vmem:[#allocation40_spill] sm:$0xff] %v2203_v42  ;;  %v301_v40 = vpop.permute.xlu1 %300  ;;  %v844_v28 = vmul.f32 %v2817_v45, %v828_v46  ;;  %v214_v9 = vmul.f32 %v2827_v43, %v2826_v29  ;;  %v721_v13 = vsel %vm714_vm7, %v711_v52, %v2828_v38  ;;  %v2830_v29 = vld [vmem:[#allocation19_spill] sm:$0xff]  ;;  %v2831_v45 = vld [vmem:[#allocation25_spill] sm:$0xff] }
 0x1d5   :  { %v545_v11 = vpop.permute.xlu0 %544  ;;  %v288_v42 = vmul.f32 %v2824_v6, %v272_v61  ;;  %v213_v59 = vmul.f32 %v2827_v43, %v2830_v29 }
 0x1d6   :  { %v2207_v50 = vadd.f32 %v844_v28, %v772_v23  ;;  %v270_v23 = vmul.f32 %v1996_v10, %v243_v19  ;;  %v273_v28 = vmul.f32 %v2009_v55, %v237_v39  ;;  %v719_v19 = vsel %vm714_vm7, %v2828_v38, %v703_v32 }
 0x1d7   :  { %v2246_v39 = vrot.slane %v2152_v48, %v1909_v17  ;;  %v216_v32 = vmul.f32 %v2827_v43, %v2831_v45  ;;  %v2260_v48 = vrot.slane %v804_v56, %v2825_v30  ;;  %v2838_v45 = vld [vmem:[#allocation45_spill] sm:$0xff] }
 0x1d8   :  { %2819 = vst [vmem:[#allocation55_spill] sm:$0xff] %v2207_v50  ;;  %v309_v24 = vpop.permute.xlu1 %308  ;;  %v287_v50 = vmul.f32 %v2824_v6, %v271_v58  ;;  %v2829_v58 = vld [vmem:[#allocation20_spill] sm:$0xff]  ;;  %v286_v55 = vmul.f32 %v2824_v6, %v270_v23  ;;  %v289_v10 = vmul.f32 %v2824_v6, %v273_v28  ;;  %v2266_v6 = vmul.f32 %v2235_v4, %v719_v19  ;;  %v2833_v28 = vld [vmem:[#allocation35_spill] sm:$0xff]  ;;  %v2836_v19 = vld [vmem:[#allocation34_spill] sm:$0xff] }
 0x1d9   :  { %v553_v1 = vpop.permute.xlu0 %552  ;;  %v215_v61 = vmul.f32 %v2827_v43, %v2829_v58  ;;  %v400_v52 = vsel %vm394_vm5, %v2833_v28, %v385_v25  ;;  %v2272_v29 = vmul.f32 %v2246_v39, %v721_v13  ;;  %v2835_v43 = vld [vmem:[#allocation41_spill] sm:$0xff]  ;;  %v402_v17 = vsel %vm394_vm5, %v393_v62, %v2833_v28 }
 0x1da   :  { %v295_v58 = vadd.f32 %v287_v50, %v214_v9  ;;  %2832 = vst [vmem:[#allocation32_spill] sm:$0xff] %v2266_v6  ;;  %v398_v30 = vsel %vm394_vm5, %v385_v25, %v2835_v43  ;;  %v294_v50 = vadd.f32 %v286_v55, %v213_v59  ;;  %v297_v9 = vadd.f32 %v289_v10, %v216_v32  ;;  %v2839_v55 = vld [vmem:[#allocation36_spill] sm:$0xff]  ;;  %v2843_v6 = vld [vmem:[#allocation11_spill] sm:$0xff] }
 0x1db   :  { %v296_v23 = vadd.f32 %v288_v42, %v215_v61  ;;  %2834 = vst [vmem:[#allocation31_spill] sm:$0xff] %v2272_v29  ;;  %v2285_v61 = vsel %vm794_vm8, %v2836_v19, %v783_v18  ;;  %v431_v25 = vmul.f32 %v2015_v3, %v400_v52  ;;  %v396_v28 = vsel %vm394_vm5, %v2835_v43, %v393_v62  ;;  %v2840_v43 = vld [vmem:[#allocation37_spill] sm:$0xff] }
 0x1dc   :  { %v2209_v2 = vpop.permute.xlu1 %460  ;;  %2837 = vst [vmem:[#allocation22_spill] sm:$0xff] %v2285_v61  ;;  %v560_v29 = vsel %vm554_vm6, %v2838_v45, %v545_v11  ;;  %v432_v59 = vmul.f32 %v2018_v31, %v398_v30  ;;  %v430_v18 = vmul.f32 %v2023_v57, %v402_v17  ;;  %v558_v32 = vsel %vm554_vm6, %v545_v11, %v2043_v22  ;;  %v2841_v57 = vld [vmem:[#allocation38_spill] sm:$0xff] }
 0x1dd   :  { %v705_v56 = vpop.permute.xlu0 %704  ;;  %v556_v52 = vsel %vm554_vm6, %v2043_v22, %v553_v1  ;;  %v562_v62 = vsel %vm554_vm6, %v553_v1, %v2838_v45  ;;  %v590_v11 = vmul.f32 %v2030_v33, %v560_v29  ;;  %v2842_v22 = vld [vmem:[#allocation39_spill] sm:$0xff]  ;;  %v447_v61 = vmul.f32 %v2843_v6, %v431_v25 }
 0x1de   :  { %v2322_v45 = vsel %vm794_vm8, %v2195_v37, %v2836_v19  ;;  %v592_v29 = vmul.f32 %v2089_v16, %v556_v52 }
 0x1e0   :  { %v2211_v51 = vpop.permute.xlu1 %468 }
 0x1e1   :  { %v713_v1 = vpop.permute.xlu0 %712 }
 0x1e4   :  { %v2227_v46 = vpop.permute.xlu1 %620 }
 0x1e8   :  { %v2237_v7 = vpop.permute.xlu1 %628 }
 0x1ec   :  { %v305_v38 = vpop.permute.xlu1 %304 }
 0x1ed   :  { %v320_v42 = vsel %vm314_vm1, %v301_v40, %v305_v38  ;;  %v318_v13 = vsel %vm314_vm1, %v305_v38, %v309_v24 }
 0x1ee   :  { %v351_v10 = vmul.f32 %v2839_v55, %v320_v42  ;;  %v352_v3 = vmul.f32 %v2840_v43, %v318_v13  ;;  %v433_v42 = vmul.f32 %v2026_v5, %v396_v28  ;;  %v448_v28 = vmul.f32 %v2843_v6, %v432_v59  ;;  %v2845_v59 = vld [vmem:[#allocation12_spill] sm:$0xff] }
 0x1f0   :  { %v313_v38 = vpop.permute.xlu1 %312 }
 0x1f1   :  { %v316_v30 = vsel %vm314_vm1, %v309_v24, %v313_v38  ;;  %v322_v17 = vsel %vm314_vm1, %v313_v38, %v301_v40  ;;  %v591_v24 = vmul.f32 %v2063_v41, %v558_v32  ;;  %v2844_v40 = vld [vmem:[#allocation23_spill] sm:$0xff]  ;;  %v593_v38 = vmul.f32 %v2116_v34, %v562_v62 }
 0x1f2   :  { %v350_v31 = vmul.f32 %v2841_v57, %v322_v17  ;;  %v353_v55 = vmul.f32 %v2842_v22, %v316_v30  ;;  %v367_v13 = vmul.f32 %v2844_v40, %v351_v10  ;;  %v446_v17 = vmul.f32 %v2843_v6, %v430_v18 }
 0x1f3   :  { %v368_v33 = vmul.f32 %v2844_v40, %v352_v3  ;;  %v449_v10 = vmul.f32 %v2843_v6, %v433_v42  ;;  %v606_v32 = vmul.f32 %v2845_v59, %v590_v11  ;;  %v607_v18 = vmul.f32 %v2845_v59, %v591_v24  ;;  %v785_v11 = vpop.permute.xlu0 %784  ;;  %v2846_v24 = vld [vmem:[#allocation26_spill] sm:$0xff] }
 0x1f4   :  { %v366_v30 = vmul.f32 %v2844_v40, %v350_v31  ;;  %v465_v25 = vpop.permute.xlu1 %464  ;;  %v369_v52 = vmul.f32 %v2844_v40, %v353_v55  ;;  %v720_v3 = vsel %vm714_vm7, %v2071_v36, %v705_v56  ;;  %v375_v62 = vadd.f32 %v367_v13, %v295_v58 }
 0x1f5   :  { %v478_v37 = vsel %vm474_vm2, %v465_v25, %v2211_v51  ;;  %v480_v19 = vsel %vm474_vm2, %v2209_v2, %v465_v25  ;;  %v608_v41 = vmul.f32 %v2845_v59, %v592_v29  ;;  %v609_v25 = vmul.f32 %v2845_v59, %v593_v38 }
 0x1f6   :  { %v511_v31 = vmul.f32 %v1955_v49, %v480_v19  ;;  %v512_v16 = vmul.f32 %v1947_v47, %v478_v37  ;;  %v718_v6 = vsel %vm714_vm7, %v705_v56, %v2099_v12  ;;  %v374_v55 = vadd.f32 %v366_v30, %v294_v50 }
 0x1f7   :  { %v376_v40 = vadd.f32 %v368_v33, %v296_v23  ;;  %v750_v29 = vmul.f32 %v2235_v4, %v720_v3  ;;  %v377_v38 = vadd.f32 %v369_v52, %v297_v9  ;;  %v751_v50 = vmul.f32 %v2166_v26, %v718_v6 }
 0x1f8   :  { %v473_v42 = vpop.permute.xlu1 %472  ;;  %v527_v19 = vmul.f32 %v2846_v24, %v511_v31  ;;  %v716_v33 = vsel %vm714_vm7, %v2099_v12, %v713_v1  ;;  %v455_v23 = vadd.f32 %v447_v61, %v375_v62  ;;  %v454_v30 = vadd.f32 %v446_v17, %v374_v55  ;;  %v793_v55 = vpop.permute.xlu0 %792 }
 0x1f9   :  { %v476_v58 = vsel %vm474_vm2, %v2211_v51, %v473_v42  ;;  %v482_v13 = vsel %vm474_vm2, %v473_v42, %v2209_v2  ;;  %v528_v51 = vmul.f32 %v2846_v24, %v512_v16  ;;  %v722_v2 = vsel %vm714_vm7, %v713_v1, %v2071_v36 }
 0x1fa   :  { %v510_v37 = vmul.f32 %v1958_v27, %v482_v13  ;;  %v513_v56 = vmul.f32 %v1965_v63, %v476_v58  ;;  %v456_v31 = vadd.f32 %v448_v28, %v376_v40  ;;  %v535_v3 = vadd.f32 %v527_v19, %v455_v23  ;;  %v2847_v19 = vld [vmem:[#allocation27_spill] sm:$0xff] }
 0x1fb   :  { %v457_v12 = vadd.f32 %v449_v10, %v377_v38  ;;  %v752_v17 = vmul.f32 %v2177_v53, %v716_v33  ;;  %v753_v62 = vmul.f32 %v2246_v39, %v722_v2  ;;  %v798_v28 = vsel %vm794_vm8, %v785_v11, %v2155_v8 }
 0x1fc   :  { %v526_v9 = vmul.f32 %v2846_v24, %v510_v37  ;;  %v529_v59 = vmul.f32 %v2846_v24, %v513_v56  ;;  %v625_v52 = vpop.permute.xlu1 %624  ;;  %v536_v42 = vadd.f32 %v528_v51, %v456_v31  ;;  %v800_v38 = vsel %vm794_vm8, %v2125_v54, %v785_v11  ;;  %v2848_v11 = vld [vmem:[#allocation13_spill] sm:$0xff] }
 0x1fd   :  { %v638_v6 = vsel %vm634_vm3, %v625_v52, %v2237_v7  ;;  %v640_v16 = vsel %vm634_vm3, %v2227_v46, %v625_v52  ;;  %v615_v37 = vadd.f32 %v607_v18, %v535_v3  ;;  %v802_v23 = vsel %vm794_vm8, %v793_v55, %v2125_v54 }
 0x1fe   :  { %v534_v61 = vadd.f32 %v526_v9, %v454_v30  ;;  %v670_v36 = vmul.f32 %v1983_v14, %v640_v16  ;;  %v671_v1 = vmul.f32 %v1977_v21, %v638_v6  ;;  %v537_v40 = vadd.f32 %v529_v59, %v457_v12 }
 0x1ff   :  { %v766_v2 = vmul.f32 %v2848_v11, %v750_v29  ;;  %v616_v59 = vadd.f32 %v608_v41, %v536_v42  ;;  %v830_v31 = vmul.f32 %v2260_v48, %v800_v38  ;;  %v831_v54 = vmul.f32 %v2184_v44, %v798_v28  ;;  %v2850_v42 = vld [vmem:[#allocation29_spill] sm:$0xff] }
 0x200   :  { %v614_v24 = vadd.f32 %v606_v32, %v534_v61  ;;  %v686_v58 = vmul.f32 %v2847_v19, %v670_v36  ;;  %v687_v10 = vmul.f32 %v2847_v19, %v671_v1  ;;  %v633_v13 = vpop.permute.xlu1 %632  ;;  %v796_v32 = vsel %vm794_vm8, %v2155_v8, %v793_v55  ;;  %v2849_v61 = vld [vmem:[#allocation22_spill] sm:$0xff] }
 0x201   :  { %v636_v56 = vsel %vm634_vm3, %v2237_v7, %v633_v13  ;;  %v642_v33 = vsel %vm634_vm3, %v633_v13, %v2227_v46  ;;  %v767_v7 = vmul.f32 %v2848_v11, %v751_v50  ;;  %v617_v46 = vadd.f32 %v609_v25, %v537_v40  ;;  %v2853_v13 = vld [vmem:[#allocation31_spill] sm:$0xff] }
 0x202   :  { %v672_v51 = vmul.f32 %v1980_v20, %v636_v56  ;;  %v673_v18 = vmul.f32 %v1986_v0, %v642_v33  ;;  %v694_v30 = vadd.f32 %v686_v58, %v614_v24  ;;  %v695_v9 = vadd.f32 %v687_v10, %v615_v37  ;;  %v2852_v58 = vld [vmem:[#allocation28_spill] sm:$0xff] }
 0x203   :  { %v832_v3 = vmul.f32 %v2193_v60, %v796_v32  ;;  %v833_v6 = vmul.f32 %v2263_v35, %v802_v23  ;;  %v768_v29 = vmul.f32 %v2848_v11, %v752_v17  ;;  %v769_v50 = vmul.f32 %v2848_v11, %v753_v62  ;;  %v2854_v32 = vld [vmem:[#allocation14_spill] sm:$0xff] }
 0x204   :  { %v688_v52 = vmul.f32 %v2847_v19, %v672_v51  ;;  %v689_v8 = vmul.f32 %v2847_v19, %v673_v18  ;;  %v774_v41 = vadd.f32 %v766_v2, %v694_v30  ;;  %v775_v25 = vadd.f32 %v767_v7, %v695_v9  ;;  %v2851_v19 = vld [vmem:[#allocation32_spill] sm:$0xff]  ;;  %v2855_v18 = vld [vmem:[#allocation53_spill] sm:$0xff]  ;;  %v2856_v2 = vld [vmem:[#allocation54_spill] sm:$0xff]  ;;  %v868_v30 = vpop.permute.xlu0 %867 }
 0x205   :  { %v826_v36 = vmul.f32 %v2260_v48, %v2849_v61  ;;  %v829_v1 = vmul.f32 %v2263_v35, %v2322_v45  ;;  %v846_v40 = vmul.f32 %v2850_v42, %v830_v31  ;;  %v847_v24 = vmul.f32 %v2850_v42, %v831_v54 }
 0x206   :  { %v696_v16 = vadd.f32 %v688_v52, %v616_v59  ;;  %v697_v12 = vadd.f32 %v689_v8, %v617_v46  ;;  %v848_v17 = vmul.f32 %v2850_v42, %v832_v3  ;;  %v849_v62 = vmul.f32 %v2850_v42, %v833_v6  ;;  %v2857_v6 = vld [vmem:[#allocation40_spill] sm:$0xff] }
 0x207   :  { %v762_v10 = vmul.f32 %v2852_v58, %v2851_v19  ;;  %v765_v38 = vmul.f32 %v2852_v58, %v2853_v13  ;;  %v854_v37 = vadd.f32 %v846_v40, %v774_v41  ;;  %v855_v33 = vadd.f32 %v847_v24, %v775_v25  ;;  %v2859_v19 = vld [vmem:[#allocation17_spill] sm:$0xff]  ;;  %v2860_v58 = vld [vmem:[#allocation24_spill] sm:$0xff]  ;;  %v2861_v13 = vld [vmem:[#allocation18_spill] sm:$0xff] }
 0x208   :  { %v776_v55 = vadd.f32 %v768_v29, %v696_v16  ;;  %v777_v28 = vadd.f32 %v769_v50, %v697_v12  ;;  %v842_v23 = vmul.f32 %v2854_v32, %v826_v36  ;;  %v845_v51 = vmul.f32 %v2854_v32, %v829_v1  ;;  %v2858_v50 = vld [vmem:[#allocation55_spill] sm:$0xff] }
 0x209   :  { %v770_v11 = vadd.f32 %v762_v10, %v2855_v18  ;;  %v773_v7 = vadd.f32 %v765_v38, %v2856_v2  ;;  %v875_v9 = vadd.f32 %v868_v30, %v855_v33  ;;  %v874_v46 = vadd.f32 %v868_v30, %v854_v37  ;;  %v2862_v38 = vld [vmem:[#allocation25_spill] sm:$0xff]  ;;  %v2863_v33 = vld [vmem:[#allocation15_spill] sm:$0xff] }
 0x20a   :  { %v856_v56 = vadd.f32 %v848_v17, %v776_v55  ;;  %v857_v45 = vadd.f32 %v849_v62, %v777_v28  ;;  %v888_v10 = vpack.c.bf16 %v2860_v58, %v2859_v19  ;;  %v890_v37 = vpack.c.bf16 %v2862_v38, %v2861_v13  ;;  %v886_v2 = vld [vmem:[%s2695_s6] sm:$0xf]  ;;  %v1412_v13 = vld [vmem:[#allocation2 + $0x8] sm:$0xff] }
 0x20b   :  { %v850_v8 = vadd.f32 %v842_v23, %v770_v11  ;;  %v853_v31 = vadd.f32 %v845_v51, %v773_v7  ;;  %v883_v41 = vmax.f32 %v875_v9, 0.0  ;;  %v882_v61 = vmax.f32 %v874_v46, 0.0  ;;  %v2865_v23 = vld [vmem:[#allocation16_spill] sm:$0xff]  ;;  %v1411_v58 = vld [vmem:[#allocation2] sm:$0xff] }
 0x20c   :  { %v877_v59 = vadd.f32 %v868_v30, %v857_v45  ;;  %v876_v52 = vadd.f32 %v868_v30, %v856_v56  ;;  %v891_v56 = vld [vmem:[%s2696_s7] sm:$0xf]  ;;  %v2866_v51 = vld [vmem:[#allocation20_spill] sm:$0xff]  ;;  %v2867_v11 = vmov 0  }
 0x20d   :  { %v2864_v45 = vld [vmem:[#allocation19_spill] sm:$0xff]  ;;  %v889_v18 = vpack.c.bf16 %v2866_v51, %v2865_v23 }
 0x20e   :  { %v885_v25 = vmax.f32 %v877_v59, 0.0  ;;  %v884_v36 = vmax.f32 %v876_v52, 0.0  ;;  %v887_v32 = vpack.c.bf16 %v2864_v45, %v2863_v33  ;;  %v1414_v33 = vld [vmem:[#allocation2 + $0x18] sm:$0xff] }
 0x211   :  { %v863_v54 = vpop.permute.xlu1 %862 }
 0x212   :  { %v870_v3 = vadd.f32 %v863_v54, %v850_v8  ;;  %v871_v29 = vadd.f32 %v863_v54, %v2857_v6  ;;  %v872_v16 = vadd.f32 %v863_v54, %v2858_v50  ;;  %v873_v12 = vadd.f32 %v863_v54, %v853_v31 }
 0x214   :  { %v878_v1 = vmax.f32 %v870_v3, 0.0  ;;  %v880_v55 = vmax.f32 %v872_v16, 0.0  ;;  %v879_v28 = vmax.f32 %v871_v29, 0.0  ;;  %v881_v42 = vmax.f32 %v873_v12, 0.0 }
 0x215   :  { %v1070_v7 = vpop.permute.xlu1 %1069 }
 0x216   :  { %v893_v40 = vpack.c.bf16 %v883_v41, %v879_v28  ;;  %v895_v24 = vpack.c.bf16 %v885_v25, %v881_v42  ;;  %v892_v17 = vpack.c.bf16 %v882_v61, %v878_v1  ;;  %v894_v62 = vpack.c.bf16 %v884_v36, %v880_v55 }
 0x218   :  { %899 = vmatprep.subr.bf16.mxu0 %v893_v40  ;;  %940 = vmatprep.subr.bf16.mxu1 %v895_v24 }
 0x219   :  { %900 = vmatpush1.bf16.msra.mxu0 %v892_v17  ;;  %941 = vmatpush1.bf16.msra.mxu1 %v894_v62 }
 0x21a   :  { %984 = vmatprep.subr.bf16.mxu0 %v888_v10  ;;  %1025 = vmatprep.subr.bf16.mxu1 %v890_v37  ;;  %v2452_v3 = vpop.permute.xlu1 %1079  ;;  %v1413_v37 = vld [vmem:[#allocation2 + $0x10] sm:$0xff]  ;;  %v1132_v23 = vpop.permute.xlu0 %1131 }
 0x21c   :  { %1357 = vmatmul.mubr.msk.bf16.vlgmr.msra.gmra.mrb[4].mxu0 %vm99_vm0, %v891_v56  ;;  %1358 = vmatmul.mubr.msk.bf16.vlgmr.msra.gmra.mrb[4].mxu1 %vm99_vm0, %v891_v56 }
 0x21d   :  { %985 = vmatpush1.bf16.msra.mxu0 %v887_v32  ;;  %1026 = vmatpush1.bf16.msra.mxu1 %v889_v18  ;;  %v1310_v32 = vld [vmem:[%s2699_s10] sm:$0xff]  ;;  %s1512_s10 = smov [#allocation7]  }
 0x21e   :  { %1016 = vmatprep.mubr.bf16.mxu0 %v2867_v11  ;;  %1057 = vmatprep.mubr.bf16.mxu1 %v2867_v11  ;;  %s1341_s29 = sshll.u32 %s1512_s10, 4  ;;  %s1342_s29 = int_to_ptr.vmem [resolvable:$true] %s1341_s29 }
 0x21f   :  { %v2517_v51 = vpop.permute.xlu0 %1187  ;;  %s1463_s2 = scalar_lea.vmem %s1342_s29, 1024  ;;  %p1468_p3 = scmp.lt.s32.totalorder %s1342_s29, %s1342_s29 }
 0x220   :  { %p1464_p2 = scmp.ne.s32.totalorder %s1342_s29, %s1463_s2  ;;  %p1469_p4 = scmp.lt.s32.totalorder %s1463_s2, %s1463_s2 }
 0x222   :  { %p1470_p5 = por %p1469_p4, %p1468_p3 }
 0x224   :  { %1359 = vmatmul.mubr.msk.bf16.vlgmr.msra.gmra.mrb[8].mxu0 %vm99_vm0, %v886_v2  ;;  %1360 = vmatmul.mubr.msk.bf16.vlgmr.msra.gmra.mrb[8].mxu1 %vm99_vm0, %v886_v2  ;;  %p1471_p6 = pnand %p1470_p5, %p1464_p2 }
 0x227   :  { %v2521_v11 = vpop.permute.xlu1 %1159 }
 0x22f   :  { %v2519_v18 = vpop.permute.xlu0 %1215 }
 0x234   :  { %v2523_v2 = vpop.permute.xlu0 %1243 }
 0x2ef   :  { %v933_v30 = vpop.f32.mrb[4].mxu0  ;;  %v974_v9 = vpop.f32.mrb[4].mxu1 }
 0x2f0   :  { %v935_v59 = vpop.f32.mrb[5].mxu0  ;;  %v976_v46 = vpop.f32.mrb[5].mxu1 }
 0x2f1   :  { %v937_v52 = vpop.f32.mrb[6].mxu0  ;;  %v978_v8 = vpop.f32.mrb[6].mxu1 }
 0x2f2   :  { %v938_v31 = vpop.f32.mrb[7].mxu0  ;;  %v979_v54 = vpop.f32.mrb[7].mxu1 }
 0x2f7   :  { %v1018_v6 = vpop.f32.mrb[8].mxu0  ;;  %v1059_v29 = vpop.f32.mrb[8].mxu1 }
 0x2f8   :  { %v1019_v50 = vadd.f32 %v1018_v6, %v933_v30  ;;  %v1060_v16 = vadd.f32 %v1059_v29, %v974_v9  ;;  %v1020_v12 = vpop.f32.mrb[9].mxu0  ;;  %v1061_v41 = vpop.f32.mrb[9].mxu1 }
 0x2f9   :  { %v1021_v25 = vadd.f32 %v1020_v12, %v935_v59  ;;  %v1062_v61 = vadd.f32 %v1061_v41, %v976_v46  ;;  %v1022_v36 = vpop.f32.mrb[10].mxu0  ;;  %v1063_v1 = vpop.f32.mrb[10].mxu1  ;;  %v2868_v12 = vld [vmem:[#allocation42_spill] sm:$0xff] }
 0x2fa   :  { %v1072_v55 = vadd.f32 %v1070_v7, %v1019_v50  ;;  %v1074_v28 = vadd.f32 %v1070_v7, %v1060_v16  ;;  %v1023_v42 = vpop.f32.mrb[11].mxu0  ;;  %v1064_v40 = vpop.f32.mrb[11].mxu1 }
 0x2fb   :  { %v2454_v24 = vadd.f32 %v1070_v7, %v1021_v25  ;;  %v2456_v17 = vadd.f32 %v1070_v7, %v1062_v61  ;;  %v2525_v30 = vpop.permute.xlu0 %1271 }
 0x2fc   :  { %v2459_v62 = vmul.f32 %v2452_v3, %v1072_v55  ;;  %v2462_v19 = vmul.f32 %v2452_v3, %v1074_v28  ;;  %1114 = vrot.lane.b32.xlu1 %v1072_v55, %s1505_s13  ;;  %1086 = vrot.lane.b32.xlu0 %v1072_v55, %s1504_s4  ;;  %v1320_v10 = vadd.f32 %v1411_v58, %v1072_v55 }
 0x2fd   :  { %v1321_v38 = vadd.f32 %v1412_v13, %v2454_v24  ;;  %v1322_v56 = vadd.f32 %v1413_v37, %v1074_v28  ;;  %v1323_v45 = vadd.f32 %v1414_v33, %v2456_v17  ;;  %v1083_v13 = vmul.f32 %v2452_v3, %v2454_v24  ;;  %v2871_v33 = vld [vmem:[#allocation36_spill] sm:$0xff] }
 0x2fe   :  { %1324 = vst [vmem:[#allocation7] sm:$0xff] %v1320_v10 }
 0x2ff   :  { %1325 = vst [vmem:[#allocation7 + $0x8] sm:$0xff] %v1321_v38  ;;  %1326 = vst [vmem:[#allocation7 + $0x10] sm:$0xff] %v1322_v56  ;;  %v2527_v59 = vpop.permute.xlu0 %1299  ;;  %v2870_v38 = vld [vmem:[#allocation43_spill] sm:$0xff] }
 0x300   :  { %1142 = vrot.lane.b32.xlu1 %v1072_v55, %s1508_s16  ;;  %1090 = vrot.lane.b32.xlu0 %v1074_v28, %s1504_s4  ;;  %1327 = vst [vmem:[#allocation7 + $0x18] sm:$0xff] %v1323_v45 }
 0x303   :  { %v1104_v8 = vpop.permute.xlu0 %1103 }
 0x304   :  { %1170 = vrot.lane.b32.xlu1 %v1072_v55, %s1506_s14  ;;  %1118 = vrot.lane.b32.xlu0 %v1074_v28, %s1505_s13 }
 0x308   :  { %1198 = vrot.lane.b32.xlu1 %v1072_v55, %s1509_s17  ;;  %1146 = vrot.lane.b32.xlu0 %v1074_v28, %s1508_s16 }
 0x30c   :  { %1226 = vrot.lane.b32.xlu1 %v1072_v55, %s1507_s15  ;;  %1174 = vrot.lane.b32.xlu0 %v1074_v28, %s1506_s14 }
 0x310   :  { %1254 = vrot.lane.b32.xlu1 %v1072_v55, %s1510_s19  ;;  %1202 = vrot.lane.b32.xlu0 %v1074_v28, %s1509_s17 }
 0x314   :  { %1088 = vrot.lane.b32.xlu1 %v2454_v24, %s1504_s4  ;;  %1230 = vrot.lane.b32.xlu0 %v1074_v28, %s1507_s15 }
 0x318   :  { %1092 = vrot.lane.b32.xlu1 %v2456_v17, %s1504_s4  ;;  %1258 = vrot.lane.b32.xlu0 %v1074_v28, %s1510_s19 }
 0x31c   :  { %1116 = vrot.lane.b32.xlu1 %v2454_v24, %s1505_s13  ;;  %1282 = vrot.lane.b32.xlu0 %v1072_v55, %s1511_s20 }
 0x320   :  { %1120 = vrot.lane.b32.xlu1 %v2456_v17, %s1505_s13  ;;  %1286 = vrot.lane.b32.xlu0 %v1074_v28, %s1511_s20  ;;  %v2869_v28 = vld [vmem:[#allocation44_spill] sm:$0xff] }
 0x324   :  { %1144 = vrot.lane.b32.xlu1 %v2454_v24, %s1508_s16  ;;  %1313 = vperm.xlu0 %1409, %v1310_v32  }
 0x328   :  { %1148 = vrot.lane.b32.xlu1 %v2456_v17, %s1508_s16 }
 0x32c   :  { %1172 = vrot.lane.b32.xlu1 %v2454_v24, %s1506_s14 }
 0x330   :  { %1176 = vrot.lane.b32.xlu1 %v2456_v17, %s1506_s14 }
 0x334   :  { %1200 = vrot.lane.b32.xlu1 %v2454_v24, %s1509_s17 }
 0x338   :  { %1204 = vrot.lane.b32.xlu1 %v2456_v17, %s1509_s17 }
 0x33c   :  { %1228 = vrot.lane.b32.xlu1 %v2454_v24, %s1507_s15 }
 0x340   :  { %1232 = vrot.lane.b32.xlu1 %v2456_v17, %s1507_s15 }
 0x344   :  { %1256 = vrot.lane.b32.xlu1 %v2454_v24, %s1510_s19 }
 0x348   :  { %1260 = vrot.lane.b32.xlu1 %v2456_v17, %s1510_s19 }
 0x34c   :  { %1284 = vrot.lane.b32.xlu1 %v2454_v24, %s1511_s20 }
 0x350   :  { %1288 = vrot.lane.b32.xlu1 %v2456_v17, %s1511_s20 }
 0x36e   :  { %v1115_v7 = vpop.permute.xlu1 %1114  ;;  %v1087_v54 = vpop.permute.xlu0 %1086 }
 0x372   :  { %v1143_v9 = vpop.permute.xlu1 %1142  ;;  %v1091_v16 = vpop.permute.xlu0 %1090 }
 0x376   :  { %v2529_v46 = vpop.permute.xlu1 %1170  ;;  %v1119_v1 = vpop.permute.xlu0 %1118 }
 0x37a   :  { %v2531_v52 = vpop.permute.xlu1 %1198 }
 0x37e   :  { %v2533_v31 = vpop.permute.xlu1 %1226 }
 0x382   :  { %v2535_v6 = vpop.permute.xlu1 %1254 }
 0x386   :  { %v1089_v29 = vpop.permute.xlu1 %1088 }
 0x387   :  { %v1096_v50 = vsel %vm235_vm4, %v1087_v54, %v1089_v29  ;;  %v1095_v36 = vsel %vm235_vm4, %v1089_v29, %v1091_v16 }
 0x388   :  { %v1099_v41 = vmul.f32 %v1096_v50, %v2868_v12  ;;  %v1100_v37 = vmul.f32 %v1095_v36, %v2870_v38 }
 0x38a   :  { %v1093_v25 = vpop.permute.xlu1 %1092  ;;  %v1107_v55 = vmul.f32 %v1104_v8, %v1099_v41  ;;  %v2872_v41 = vld [vmem:[#allocation46_spill] sm:$0xff]  ;;  %v1108_v36 = vmul.f32 %v1104_v8, %v1100_v37 }
 0x38b   :  { %v1097_v61 = vsel %vm235_vm4, %v1093_v25, %v1087_v54  ;;  %v1094_v56 = vsel %vm235_vm4, %v1091_v16, %v1093_v25  ;;  %v1147_v25 = vpop.permute.xlu0 %1146 }
 0x38c   :  { %v1098_v42 = vmul.f32 %v1097_v61, %v2869_v28  ;;  %v1111_v32 = vadd.f32 %v1107_v55, %v1083_v13  ;;  %v1101_v61 = vmul.f32 %v1094_v56, %v2872_v41  ;;  %v2873_v56 = vld [vmem:[#allocation47_spill] sm:$0xff] }
 0x38e   :  { %v1117_v40 = vpop.permute.xlu1 %1116  ;;  %v1106_v54 = vmul.f32 %v1104_v8, %v1098_v42  ;;  %v1109_v13 = vmul.f32 %v1104_v8, %v1101_v61 }
 0x38f   :  { %v1123_v58 = vsel %vm314_vm1, %v1117_v40, %v1119_v1  ;;  %v1124_v10 = vsel %vm314_vm1, %v1115_v7, %v1117_v40 }
 0x390   :  { %v1127_v45 = vmul.f32 %v1124_v10, %v2871_v33  ;;  %v1128_v29 = vmul.f32 %v1123_v58, %v2840_v43  ;;  %v1110_v55 = vadd.f32 %v1106_v54, %v2459_v62  ;;  %v2874_v33 = vld [vmem:[#allocation48_spill] sm:$0xff]  ;;  %v1085_v62 = vmul.f32 %v2452_v3, %v2456_v17 }
 0x392   :  { %v1135_v50 = vmul.f32 %v1132_v23, %v1127_v45  ;;  %v1121_v12 = vpop.permute.xlu1 %1120  ;;  %v1136_v42 = vmul.f32 %v1132_v23, %v1128_v29 }
 0x393   :  { %v1122_v28 = vsel %vm314_vm1, %v1119_v1, %v1121_v12  ;;  %v1125_v24 = vsel %vm314_vm1, %v1121_v12, %v1115_v7  ;;  %v1112_v7 = vadd.f32 %v1108_v36, %v2462_v19 }
 0x394   :  { %v1139_v40 = vadd.f32 %v1135_v50, %v1111_v32  ;;  %v1126_v16 = vmul.f32 %v1125_v24, %v2841_v57  ;;  %v1129_v43 = vmul.f32 %v1122_v28, %v2842_v22  ;;  %v1113_v50 = vadd.f32 %v1109_v13, %v1085_v62  ;;  %v2875_v28 = vld [vmem:[#allocation49_spill] sm:$0xff] }
 0x395   :  { %v1140_v22 = vadd.f32 %v1136_v42, %v1112_v7 }
 0x396   :  { %v1134_v58 = vmul.f32 %v1132_v23, %v1126_v16  ;;  %v1145_v10 = vpop.permute.xlu1 %1144  ;;  %v1137_v32 = vmul.f32 %v1132_v23, %v1129_v43 }
 0x397   :  { %v1151_v38 = vsel %vm394_vm5, %v1145_v10, %v1147_v25  ;;  %v1152_v1 = vsel %vm394_vm5, %v1143_v9, %v1145_v10 }
 0x398   :  { %v1138_v37 = vadd.f32 %v1134_v58, %v1110_v55  ;;  %v1155_v57 = vmul.f32 %v1152_v1, %v2873_v56  ;;  %v1156_v45 = vmul.f32 %v1151_v38, %v2874_v33  ;;  %v1141_v17 = vadd.f32 %v1137_v32, %v1113_v50  ;;  %v1175_v55 = vpop.permute.xlu0 %1174 }
 0x39a   :  { %v1163_v8 = vmul.f32 %v2521_v11, %v1155_v57  ;;  %v1164_v54 = vmul.f32 %v2521_v11, %v1156_v45  ;;  %v1149_v29 = vpop.permute.xlu1 %1148 }
 0x39b   :  { %v1150_v12 = vsel %vm394_vm5, %v1147_v25, %v1149_v29  ;;  %v1153_v19 = vsel %vm394_vm5, %v1149_v29, %v1143_v9 }
 0x39c   :  { %v1167_v41 = vadd.f32 %v1163_v8, %v1139_v40  ;;  %v2579_v61 = vadd.f32 %v1164_v54, %v1140_v22  ;;  %v1154_v24 = vmul.f32 %v1153_v19, %v2875_v28  ;;  %v1157_v3 = vmul.f32 %v1150_v12, %v2026_v5  ;;  %v1203_v38 = vpop.permute.xlu0 %1202  ;;  %v2876_v28 = vld [vmem:[#allocation50_spill] sm:$0xff] }
 0x39e   :  { %v1162_v23 = vmul.f32 %v2521_v11, %v1154_v24  ;;  %v1165_v36 = vmul.f32 %v2521_v11, %v1157_v3  ;;  %v1173_v16 = vpop.permute.xlu1 %1172  ;;  %v2877_v3 = vld [vmem:[#allocation51_spill] sm:$0xff] }
 0x39f   :  { %v1180_v25 = vsel %vm474_vm2, %v2529_v46, %v1173_v16 }
 0x3a0   :  { %v1166_v42 = vadd.f32 %v1162_v23, %v1138_v37  ;;  %v1169_v9 = vadd.f32 %v1165_v36, %v1141_v17  ;;  %v1183_v40 = vmul.f32 %v1180_v25, %v1955_v49  ;;  %v1231_v45 = vpop.permute.xlu0 %1230 }
 0x3a2   :  { %v1191_v43 = vmul.f32 %v2517_v51, %v1183_v40  ;;  %v1177_v58 = vpop.permute.xlu1 %1176 }
 0x3a3   :  { %v1178_v5 = vsel %vm474_vm2, %v1175_v55, %v1177_v58  ;;  %v1181_v11 = vsel %vm474_vm2, %v1177_v58, %v2529_v46 }
 0x3a4   :  { %v1195_v10 = vadd.f32 %v1191_v43, %v1167_v41  ;;  %v1182_v13 = vmul.f32 %v1181_v11, %v1958_v27  ;;  %v1185_v1 = vmul.f32 %v1178_v5, %v1965_v63  ;;  %v1259_v63 = vpop.permute.xlu0 %1258  ;;  %v2878_v43 = vld [vmem:[#allocation52_spill] sm:$0xff] }
 0x3a6   :  { %v1190_v7 = vmul.f32 %v2517_v51, %v1182_v13  ;;  %v1201_v37 = vpop.permute.xlu1 %1200  ;;  %v1193_v56 = vmul.f32 %v2517_v51, %v1185_v1 }
 0x3a7   :  { %v1207_v54 = vsel %vm554_vm6, %v1201_v37, %v1203_v38  ;;  %v1208_v29 = vsel %vm554_vm6, %v2531_v52, %v1201_v37 }
 0x3a8   :  { %v1194_v49 = vadd.f32 %v1190_v7, %v1166_v42  ;;  %v1197_v62 = vadd.f32 %v1193_v56, %v1169_v9  ;;  %v1210_v24 = vmul.f32 %v1208_v29, %v2876_v28 }
 0x3aa   :  { %v1205_v57 = vpop.permute.xlu1 %1204 }
 0x3ab   :  { %v1209_v33 = vsel %vm554_vm6, %v1205_v57, %v2531_v52  ;;  %v1211_v52 = vmul.f32 %v1207_v54, %v2877_v3  ;;  %v1206_v17 = vsel %vm554_vm6, %v1203_v38, %v1205_v57 }
 0x3ac   :  { %v1213_v46 = vmul.f32 %v1209_v33, %v2116_v34  ;;  %v1179_v34 = vsel %vm474_vm2, %v1173_v16, %v1175_v55  ;;  %v1212_v58 = vmul.f32 %v1206_v17, %v2878_v43 }
 0x3ad   :  { %v1184_v16 = vmul.f32 %v1179_v34, %v1947_v47  ;;  %v1218_v47 = vmul.f32 %v2519_v18, %v1210_v24  ;;  %v1219_v5 = vmul.f32 %v2519_v18, %v1211_v52 }
 0x3ae   :  { %v1221_v27 = vmul.f32 %v2519_v18, %v1213_v46  ;;  %v1229_v22 = vpop.permute.xlu1 %1228 }
 0x3af   :  { %v1235_v19 = vsel %vm634_vm3, %v1229_v22, %v1231_v45  ;;  %v1236_v41 = vsel %vm634_vm3, %v2533_v31, %v1229_v22  ;;  %v1192_v1 = vmul.f32 %v2517_v51, %v1184_v16  ;;  %v1222_v33 = vadd.f32 %v1218_v47, %v1194_v49  ;;  %v1415_v16 = vld [vmem:[#allocation2 + $0x20] sm:$0xff] }
 0x3b0   :  { %v1225_v32 = vadd.f32 %v1221_v27, %v1197_v62  ;;  %v1238_v55 = vmul.f32 %v1236_v41, %v1983_v14  ;;  %v1239_v42 = vmul.f32 %v1235_v19, %v1977_v21 }
 0x3b2   :  { %v1233_v8 = vpop.permute.xlu1 %1232  ;;  %v1246_v37 = vmul.f32 %v2523_v2, %v1238_v55  ;;  %v1247_v56 = vmul.f32 %v2523_v2, %v1239_v42  ;;  %v1417_v42 = vld [vmem:[#allocation2 + $0x30] sm:$0xff] }
 0x3b3   :  { %v1237_v50 = vsel %vm634_vm3, %v1233_v8, %v2533_v31  ;;  %v1283_v31 = vpop.permute.xlu0 %1282  ;;  %v1234_v9 = vsel %vm634_vm3, %v1231_v45, %v1233_v8 }
 0x3b4   :  { %v1241_v12 = vmul.f32 %v1237_v50, %v1986_v0  ;;  %v1240_v14 = vmul.f32 %v1234_v9, %v1980_v20  ;;  %v1223_v20 = vadd.f32 %v1219_v5, %v1195_v10 }
 0x3b6   :  { %v1249_v23 = vmul.f32 %v2523_v2, %v1241_v12  ;;  %v1257_v36 = vpop.permute.xlu1 %1256  ;;  %v1248_v27 = vmul.f32 %v2523_v2, %v1240_v14 }
 0x3b7   :  { %v1263_v0 = vsel %vm714_vm7, %v1257_v36, %v1259_v63  ;;  %v1264_v25 = vsel %vm714_vm7, %v2535_v6, %v1257_v36  ;;  %v1287_v51 = vpop.permute.xlu0 %1286 }
 0x3b8   :  { %v1253_v40 = vadd.f32 %v1249_v23, %v1225_v32  ;;  %v1266_v11 = vmul.f32 %v1264_v25, %v2235_v4  ;;  %v1267_v13 = vmul.f32 %v1263_v0, %v2166_v26  ;;  %v1220_v4 = vmul.f32 %v2519_v18, %v1212_v58  ;;  %v1416_v25 = vld [vmem:[#allocation2 + $0x28] sm:$0xff] }
 0x3b9   :  { %v1250_v18 = vadd.f32 %v1246_v37, %v1222_v33 }
 0x3ba   :  { %v1261_v38 = vpop.permute.xlu1 %1260  ;;  %v1274_v45 = vmul.f32 %v2525_v30, %v1266_v11  ;;  %v1275_v46 = vmul.f32 %v2525_v30, %v1267_v13 }
 0x3bb   :  { %v1262_v21 = vsel %vm714_vm7, %v1259_v63, %v1261_v38  ;;  %v1265_v7 = vsel %vm714_vm7, %v1261_v38, %v2535_v6  ;;  %v1196_v6 = vadd.f32 %v1192_v1, %v2579_v61  ;;  %v1314_v28 = vpop.permute.xlu0 %1313 }
 0x3bc   :  { %v1268_v26 = vmul.f32 %v1262_v21, %v2177_v53  ;;  %v1269_v57 = vmul.f32 %v1265_v7, %v2246_v39  ;;  %v1251_v39 = vadd.f32 %v1247_v56, %v1223_v20  ;;  %v1278_v61 = vadd.f32 %v1274_v45, %v1250_v18 }
 0x3bd   :  { %v1224_v32 = vadd.f32 %v1220_v4, %v1196_v6 }
 0x3be   :  { %v1285_v62 = vpop.permute.xlu1 %1284  ;;  %v1276_v63 = vmul.f32 %v2525_v30, %v1268_v26  ;;  %v1277_v8 = vmul.f32 %v2525_v30, %v1269_v57  ;;  %v1279_v54 = vadd.f32 %v1275_v46, %v1251_v39 }
 0x3bf   :  { %v1291_v22 = vsel %vm794_vm8, %v1285_v62, %v1287_v51  ;;  %v1292_v53 = vsel %vm794_vm8, %v1283_v31, %v1285_v62  ;;  %v1252_v34 = vadd.f32 %v1248_v27, %v1224_v32 }
 0x3c0   :  { %v1294_v49 = vmul.f32 %v1292_v53, %v2260_v48  ;;  %v1295_v10 = vmul.f32 %v1291_v22, %v2184_v44  ;;  %v1281_v3 = vadd.f32 %v1277_v8, %v1253_v40  ;;  %v1418_v40 = vld [vmem:[#allocation2 + $0x38] sm:$0xff] }
 0x3c1   :  { %v1280_v24 = vadd.f32 %v1276_v63, %v1252_v34 }
 0x3c2   :  { %v1302_v2 = vmul.f32 %v2527_v59, %v1294_v49  ;;  %v1303_v29 = vmul.f32 %v2527_v59, %v1295_v10  ;;  %v1289_v50 = vpop.permute.xlu1 %1288 }
 0x3c3   :  { %v1290_v12 = vsel %vm794_vm8, %v1287_v51, %v1289_v50  ;;  %v1293_v48 = vsel %vm794_vm8, %v1289_v50, %v1283_v31 }
 0x3c4   :  { %v1306_v44 = vadd.f32 %v1302_v2, %v1278_v61  ;;  %v1307_v19 = vadd.f32 %v1303_v29, %v1279_v54  ;;  %v1296_v41 = vmul.f32 %v1290_v12, %v2193_v60  ;;  %v1297_v30 = vmul.f32 %v1293_v48, %v2263_v35 }
 0x3c6   :  { %v1316_v52 = vadd.f32 %v1314_v28, %v1306_v44  ;;  %v1317_v17 = vadd.f32 %v1314_v28, %v1307_v19  ;;  %v1304_v23 = vmul.f32 %v2527_v59, %v1296_v41  ;;  %v1305_v36 = vmul.f32 %v2527_v59, %v1297_v30 }
 0x3c8   :  { %v1328_v0 = vadd.f32 %v1415_v16, %v1316_v52  ;;  %v1329_v15 = vadd.f32 %v1416_v25, %v1317_v17  ;;  %v1308_v31 = vadd.f32 %v1304_v23, %v1280_v24  ;;  %v1309_v55 = vadd.f32 %v1305_v36, %v1281_v3 }
 0x3ca   :  { %1332 = vst [vmem:[#allocation7 + $0x20] sm:$0xff] %v1328_v0  ;;  %1333 = vst [vmem:[#allocation7 + $0x28] sm:$0xff] %v1329_v15  ;;  %v1318_v35 = vadd.f32 %v1314_v28, %v1308_v31  ;;  %v1319_v60 = vadd.f32 %v1314_v28, %v1309_v55 }
 0x3cc   :  { %v1330_v9 = vadd.f32 %v1417_v42, %v1318_v35  ;;  %v1331_v43 = vadd.f32 %v1418_v40, %v1319_v60 }
 0x3ce   :  { %1334 = vst [vmem:[#allocation7 + $0x30] sm:$0xff] %v1330_v9  ;;  %1335 = vst [vmem:[#allocation7 + $0x38] sm:$0xff] %v1331_v43 }
 0x3cf   :  { %1474 = shalt.err (!%p1471_p6)
}
 0x3d0   :  { %s1475_s12 = scalar_lea.hbm %s2700_s11, 1024 }
 0x3d1   :  { %p1476_p7 = scmp.ne.s32.totalorder %s2700_s11, %s1475_s12  ;;  %p1479_p8 = scmp.lt.u32.totalorder %s1475_s12, %s2700_s11 }
 0x3d3   :  { %p1481_p9 = pnand %p1479_p8, %p1476_p7 }
 0x3d5   :  { %1484 = shalt.err (!%p1481_p9)
}
 0x3d6   :  { %1347 = dma.vmem_to_hbm [thread:$0]  %s1342_s29, 1024, %s2700_s11, [#allocation4], %s1492_s27, %s1492_s27, %s1493_s28  }
 0x3d7   :  { %1489 = dma.done.wait [#allocation4], 1024  }
 0x3d8   :  { %1490 = vsyncadd [#allocation4], 4294966272 }
 0x3d9   :  { %1351 = vsyncpa [#allocation3], 1 }
 0x3da   :  { %1352 = vsyncpa [#allocation6], 1 }
 0x3db   :  { %1353 = vsyncpa [#allocation4], 1 }

</bundles_post_ra>
